<compile_context>
chip_gen: v6e
topology: v6e:2x2x1
jax: 0.10.0
libtpu: 0.0.40
codegen_flags: <defaults>
</compile_context>

<pallas_src>
import jax
import jax.numpy as jnp
from jax.experimental import pallas as pl
from jax.experimental.pallas import tpu as pltpu


# --------------------------------------------------------------------------- #
# Kernel
# --------------------------------------------------------------------------- #
def _resblock_kernel(x_mid_ref, x_top_ref, x_bot_ref, w1_ref, w2_ref, o_ref):
    # x_mid_ref: (1, TH, W, Cin) f32   rows h*TH .. h*TH+TH-1 of the image
    # x_top_ref: (1, 1,  W, Cin) f32   row  h*TH-1   (clamped; zero-masked at top)
    # x_bot_ref: (1, 1,  W, Cin) f32   row  h*TH+TH  (clamped; zero-masked at bottom)
    # w1_ref:    (9, Cin, Chid)  bf16  3x3 conv weights, tap-major leading dim
    # w2_ref:    (Chid, Cout)    bf16  1x1 conv weights
    # o_ref:     (1, TH, W, Cout)
    TH, W, Cout = o_ref.shape[1], o_ref.shape[2], o_ref.shape[3]
    Cin = x_mid_ref.shape[3]
    Chid = w2_ref.shape[0]

    h_idx = pl.program_id(1)
    n_h = pl.num_programs(1)

    x_mid = x_mid_ref[0]                                   # (TH, W, Cin) f32

    # Halo rows, zero-masked at the image top/bottom (pad=1 semantics).
    top_mask = (h_idx > 0).astype(jnp.float32)
    bot_mask = (h_idx < n_h - 1).astype(jnp.float32)
    top = x_top_ref[0] * top_mask                          # (1, W, Cin)
    bot = x_bot_ref[0] * bot_mask                          # (1, W, Cin)

    # ReLU'd activation slab with a 1-row halo on each side.  Outer-dim concat
    # is a cheap tile stack (no sublane relayout, no scratch round-trip).
    xp = jnp.maximum(jnp.concatenate([top, x_mid, bot], axis=0), 0.0)  # (TH+2, W, Cin)

    # dx-shifted variants with zero padding at the left/right image edge,
    # built once (f32 shifts, then a single bf16 cast each).
    zcol = jnp.zeros((TH + 2, 1, Cin), jnp.float32)
    left = jnp.concatenate([zcol, xp[:, : W - 1, :]], axis=1)    # holds x[., w-1, .]
    rght = jnp.concatenate([xp[:, 1:, :], zcol], axis=1)         # holds x[., w+1, .]
    variants = (left.astype(jnp.bfloat16),                       # kx = 0  (dx = -1)
                xp.astype(jnp.bfloat16),                         # kx = 1  (dx =  0)
                rght.astype(jnp.bfloat16))                       # kx = 2  (dx = +1)

    # ---- 3x3 conv: 9 accumulated per-tap matmuls (no materialized im2col) --
    # dy slices are outer-dim (free); dx shifts were materialized once above.
    acc = jnp.zeros((TH * W, Chid), jnp.float32)
    for ky in range(3):
        for kx in range(3):
            lhs = variants[kx][ky:ky + TH].reshape(TH * W, Cin)
            acc = acc + jnp.dot(lhs, w1_ref[ky * 3 + kx],
                                preferred_element_type=jnp.float32)

    # ---- ReLU + 1x1 conv ---------------------------------------------------
    h1 = jnp.maximum(acc, 0.0).astype(jnp.bfloat16)
    out = jnp.dot(h1, w2_ref[...], preferred_element_type=jnp.float32)  # (TH*W, Cout)

    # ---- residual add (exact f32, pre-ReLU input) ---------------------------
    resid = x_mid.reshape(TH * W, Cin)
    o_ref[...] = (resid + out).reshape(1, TH, W, Cout).astype(o_ref.dtype)


# --------------------------------------------------------------------------- #
# Generation-aware tiling
# --------------------------------------------------------------------------- #
def _vmem_capacity_bytes():
    """Physical VMEM of the local chip (64 MiB v7x, 128 MiB v5e/v6e)."""
    try:
        cap = int(pltpu.get_tpu_info().vmem_capacity_bytes)
        if cap > 0:
            return cap
    except Exception:
        pass
    return 64 * 1024 * 1024   # conservative fallback: v7x physical VMEM


def _pick_tile_rows(H, W, Cin, Chid, Cout, budget_bytes):
    """Largest row-tile TH (dividing H) fitting the VMEM budget; prefers
    M = TH*W aligned to 256 (v6e/v7x MXU), else 128 (v5e), else 8."""
    f32, bf16 = 4, 2

    def est(th):
        in_blk = 2 * th * W * Cin * f32              # double-buffered activation tile
        halo = 2 * 2 * W * Cin * f32                 # two 1-row halo blocks
        out_blk = 2 * th * W * Cout * f32            # double-buffered output tile
        slab = (th + 2) * W * Cin * (f32 + 3 * bf16)  # f32 slab + 3 bf16 shifted variants
        taps = 2 * th * W * Cin * bf16               # transient per-tap LHS copies
        accs = th * W * (Chid * (f32 + bf16) + Cout * f32 + Cin * f32)
        wts = 2 * (9 * Cin * Chid + Chid * Cout) * bf16
        return in_blk + halo + out_blk + slab + taps + accs + wts

    divisors = [d for d in range(1, H + 1) if H % d == 0]
    fitting = [d for d in divisors if est(d) <= budget_bytes]
    if not fitting:
        return 1
    for align in (256, 128, 8):
        aligned = [d for d in fitting if (d * W) % align == 0]
        if aligned:
            return max(aligned)
    return max(fitting)


# --------------------------------------------------------------------------- #
# Wrappers
# --------------------------------------------------------------------------- #
def convert_torch_conv_weights(w1_oihw, w2_oihw, dtype=jnp.bfloat16):
    """One-time conversion of PyTorch conv weights to the kernel layout.

    w1_oihw: (Chid, Cin, 3, 3) -> (9, Cin, Chid), tap-major leading dim
    w2_oihw: (Cout, Chid, 1, 1) -> (Chid, Cout)
    """
    Chid, Cin = w1_oihw.shape[0], w1_oihw.shape[1]
    w1_taps = jnp.transpose(w1_oihw, (2, 3, 1, 0)).reshape(9, Cin, Chid)
    w2_mat = jnp.transpose(w2_oihw[:, :, 0, 0], (1, 0))
    return w1_taps.astype(dtype), w2_mat.astype(dtype)


def residual_block_nhwc(x, w1_taps, w2_mat):
    """x: (B, H, W, Cin); w1_taps: (9, Cin, Chid); w2_mat: (Chid, Cout==Cin)."""
    B, H, W, Cin = x.shape
    ntap, cin_w, Chid = w1_taps.shape
    Cout = w2_mat.shape[1]
    assert ntap == 9 and cin_w == Cin
    assert Cout == Cin, "residual add requires hidden_final == in_channels"

    cap = _vmem_capacity_bytes()
    vmem_limit = min(cap * 3 // 4, 100 * 1024 * 1024)       # 48 MiB v7x, 96 MiB v5e/v6e
    TH = _pick_tile_rows(H, W, Cin, Chid, Cout,
                         budget_bytes=int(vmem_limit * 0.6))
    # Keep >= 2 grid steps when possible so both TensorCores (v7x) get work.
    if B * (H // TH) < 2:
        smaller = [d for d in range(1, TH) if H % d == 0]
        if smaller:
            TH = max(smaller)
    n_h = H // TH

    mid_map = lambda b, h: (b, h, 0, 0)
    top_map = lambda b, h: (b, jnp.maximum(h * TH - 1, 0), 0, 0)     # 1-row block index
    bot_map = lambda b, h: (b, jnp.minimum((h + 1) * TH, H - 1), 0, 0)

    return pl.pallas_call(
        _resblock_kernel,
        out_shape=jax.ShapeDtypeStruct((B, H, W, Cout), x.dtype),
        grid_spec=pltpu.PrefetchScalarGridSpec(
            num_scalar_prefetch=0,
            grid=(B, n_h),
            in_specs=[
                pl.BlockSpec((1, TH, W, Cin), mid_map),
                pl.BlockSpec((1, 1, W, Cin), top_map),
                pl.BlockSpec((1, 1, W, Cin), bot_map),
                pl.BlockSpec((9, Cin, Chid), lambda b, h: (0, 0, 0)),
                pl.BlockSpec((Chid, Cout), lambda b, h: (0, 0)),
            ],
            out_specs=pl.BlockSpec((1, TH, W, Cout), mid_map),
        ),
        compiler_params=pltpu.CompilerParams(
            dimension_semantics=("parallel", "parallel"),
            vmem_limit_bytes=int(vmem_limit)),
    )(x, x, x, w1_taps, w2_mat)


def residual_block_nchw(x_nchw, w1_oihw, w2_oihw):
    """PyTorch-convention drop-in.  Prefer the NHWC entry point in a real model:
    these boundary transposes are extra HBM passes around a mem-bound kernel."""
    w1_taps, w2_mat = convert_torch_conv_weights(w1_oihw, w2_oihw)
    x = jnp.transpose(x_nchw, (0, 2, 3, 1))
    y = residual_block_nhwc(x, w1_taps, w2_mat)
    return jnp.transpose(y, (0, 3, 1, 2))


# --------------------------------------------------------------------------- #
# Pure-JAX reference (matches the PyTorch forward pass)
# --------------------------------------------------------------------------- #
def _reference_nhwc(x, w1_oihw, w2_oihw):
    w1_hwio = jnp.transpose(w1_oihw, (2, 3, 1, 0))
    w2_hwio = jnp.transpose(w2_oihw, (2, 3, 1, 0))
    h = jnp.maximum(x, 0.0)
    h = jax.lax.conv_general_dilated(
        h, w1_hwio, window_strides=(1, 1), padding=((1, 1), (1, 1)),
        dimension_numbers=("NHWC", "HWIO", "NHWC"))
    h = jnp.maximum(h, 0.0)
    h = jax.lax.conv_general_dilated(
        h, w2_hwio, window_strides=(1, 1), padding="VALID",
        dimension_numbers=("NHWC", "HWIO", "NHWC"))
    return x + h


if __name__ == "__main__":
    # Small shapes consistent with the module (residual needs hidden_final == Cin).
    B, Cin, H, W = 2, 4, 16, 16
    hidden_inter, hidden_final = 8, Cin

    key = jax.random.PRNGKey(0)
    kx, k1, k2 = jax.random.split(key, 3)
    x_nhwc = jax.random.normal(kx, (B, H, W, Cin), dtype=jnp.float32)
    w1 = jax.random.normal(k1, (hidden_inter, Cin, 3, 3), dtype=jnp.float32) * 0.1
    w2 = jax.random.normal(k2, (hidden_final, hidden_inter, 1, 1),
                           dtype=jnp.float32) * 0.1

    # Primary NHWC path (weights converted once).
    w1_taps, w2_mat = convert_torch_conv_weights(w1, w2)
    y = jax.block_until_ready(residual_block_nhwc(x_nhwc, w1_taps, w2_mat))

    y_ref = _reference_nhwc(x_nhwc, w1, w2)
    assert y.shape == (B, H, W, Cin)
    # bf16 MXU operands -> loosen tolerance vs. the f32 reference.
    assert jnp.allclose(y, y_ref, atol=2e-2, rtol=2e-2), \
        float(jnp.max(jnp.abs(y - y_ref)))

    # PyTorch-layout compatibility path.
    x_nchw = jnp.transpose(x_nhwc, (0, 3, 1, 2))
    y2 = jax.block_until_ready(residual_block_nchw(x_nchw, w1, w2))
    assert jnp.allclose(y2, jnp.transpose(y_ref, (0, 3, 1, 2)),
                        atol=2e-2, rtol=2e-2)

    print("KERNEL_OK")
</pallas_src>

<mosaic_0001>
module attributes {stable_mosaic.version = 11 : i64} {
  func.func @_resblock_kernel(%arg0: i32, %arg1: i32, %arg2: memref<1x16x16x4xf32, #tpu.memory_space<vmem>>, %arg3: memref<1x1x16x4xf32, #tpu.memory_space<vmem>>, %arg4: memref<1x1x16x4xf32, #tpu.memory_space<vmem>>, %arg5: memref<9x4x8xbf16, #tpu.memory_space<vmem>>, %arg6: memref<8x4xbf16, #tpu.memory_space<vmem>>, %arg7: memref<1x16x16x4xf32, #tpu.memory_space<vmem>>) attributes {dimension_semantics = [#tpu.dimension_semantics<parallel>, #tpu.dimension_semantics<parallel>], iteration_bounds = array<i64: 2, 1>, scalar_prefetch = 0 : i64, scratch_operands = 0 : i64, tpu.core_type = #tpu.core_type<tc>, window_params = [{transform_indices = @transform_0, window_bounds = array<i64: 1, 16, 16, 4>}, {transform_indices = @transform_1, window_bounds = array<i64: 1, 1, 16, 4>}, {transform_indices = @transform_2, window_bounds = array<i64: 1, 1, 16, 4>}, {pipeline_mode = #tpu.pipeline_mode<synchronous>, transform_indices = @transform_3, window_bounds = array<i64: 9, 4, 8>}, {pipeline_mode = #tpu.pipeline_mode<synchronous>, transform_indices = @transform_4, window_bounds = array<i64: 8, 4>}, {transform_indices = @transform_5, window_bounds = array<i64: 1, 16, 16, 4>}]} {
    %c0 = arith.constant 0 : index
    %c0_0 = arith.constant 0 : index
    %c0_1 = arith.constant 0 : index
    %c0_2 = arith.constant 0 : index
    %0 = vector.load %arg2[%c0, %c0_0, %c0_1, %c0_2] : memref<1x16x16x4xf32, #tpu.memory_space<vmem>>, vector<1x16x16x4xf32>
    %1 = vector.shape_cast %0 : vector<1x16x16x4xf32> to vector<16x16x4xf32>
    %c0_i32 = arith.constant 0 : i32
    %2 = arith.cmpi sgt, %arg1, %c0_i32 : i32
    %3 = arith.extui %2 : i1 to i32
    %4 = arith.sitofp %3 : i32 to f32
    %c0_i32_3 = arith.constant 0 : i32
    %5 = arith.cmpi slt, %arg1, %c0_i32_3 : i32
    %6 = arith.extui %5 : i1 to i32
    %7 = arith.sitofp %6 : i32 to f32
    %c0_4 = arith.constant 0 : index
    %c0_5 = arith.constant 0 : index
    %c0_6 = arith.constant 0 : index
    %c0_7 = arith.constant 0 : index
    %8 = vector.load %arg3[%c0_4, %c0_5, %c0_6, %c0_7] : memref<1x1x16x4xf32, #tpu.memory_space<vmem>>, vector<1x1x16x4xf32>
    %9 = vector.shape_cast %8 : vector<1x1x16x4xf32> to vector<1x16x4xf32>
    %10 = vector.broadcast %4 : f32 to vector<1x16x4xf32>
    %11 = arith.mulf %9, %10 : vector<1x16x4xf32>
    %c0_8 = arith.constant 0 : index
    %c0_9 = arith.constant 0 : index
    %c0_10 = arith.constant 0 : index
    %c0_11 = arith.constant 0 : index
    %12 = vector.load %arg4[%c0_8, %c0_9, %c0_10, %c0_11] : memref<1x1x16x4xf32, #tpu.memory_space<vmem>>, vector<1x1x16x4xf32>
    %13 = vector.shape_cast %12 : vector<1x1x16x4xf32> to vector<1x16x4xf32>
    %14 = vector.broadcast %7 : f32 to vector<1x16x4xf32>
    %15 = arith.mulf %13, %14 : vector<1x16x4xf32>
    %16 = tpu.concatenate %11, %1, %15 in 0 : vector<1x16x4xf32>, vector<16x16x4xf32>, vector<1x16x4xf32> -> vector<18x16x4xf32>
    %cst = arith.constant 0.000000e+00 : f32
    %17 = vector.broadcast %cst : f32 to vector<18x16x4xf32>
    %18 = arith.maximumf %16, %17 : vector<18x16x4xf32>
    %cst_12 = arith.constant 0.000000e+00 : f32
    %19 = vector.broadcast %cst_12 : f32 to vector<18x1x4xf32>
    %20 = vector.extract_strided_slice %18 {offsets = [0, 0, 0], sizes = [18, 15, 4], strides = [1, 1, 1]} : vector<18x16x4xf32> to vector<18x15x4xf32>
    %21 = tpu.concatenate %19, %20 in 1 : vector<18x1x4xf32>, vector<18x15x4xf32> -> vector<18x16x4xf32>
    %22 = vector.extract_strided_slice %18 {offsets = [0, 1, 0], sizes = [18, 15, 4], strides = [1, 1, 1]} : vector<18x16x4xf32> to vector<18x15x4xf32>
    %23 = tpu.concatenate %22, %19 in 1 : vector<18x15x4xf32>, vector<18x1x4xf32> -> vector<18x16x4xf32>
    %24 = arith.truncf %21 : vector<18x16x4xf32> to vector<18x16x4xbf16>
    %25 = arith.truncf %18 : vector<18x16x4xf32> to vector<18x16x4xbf16>
    %26 = arith.truncf %23 : vector<18x16x4xf32> to vector<18x16x4xbf16>
    %cst_13 = arith.constant 0.000000e+00 : f32
    %27 = vector.broadcast %cst_13 : f32 to vector<256x8xf32>
    %28 = vector.extract_strided_slice %24 {offsets = [0, 0, 0], sizes = [16, 16, 4], strides = [1, 1, 1]} : vector<18x16x4xbf16> to vector<16x16x4xbf16>
    %29 = vector.shape_cast %28 : vector<16x16x4xbf16> to vector<256x4xbf16>
    %c0_14 = arith.constant 0 : index
    %c0_15 = arith.constant 0 : index
    %c0_16 = arith.constant 0 : index
    %30 = vector.load %arg5[%c0_14, %c0_15, %c0_16] : memref<9x4x8xbf16, #tpu.memory_space<vmem>>, vector<1x4x8xbf16>
    %31 = vector.shape_cast %30 : vector<1x4x8xbf16> to vector<4x8xbf16>
    %cst_17 = arith.constant dense<0.000000e+00> : vector<256x8xf32>
    %32 = tpu.matmul %29, %31, %cst_17 {dimension_numbers = #tpu.dot_dimension_numbers<[1], [0], [0], [1], [0, 0, 1, 1], [], []>} : vector<256x4xbf16>, vector<4x8xbf16>, vector<256x8xf32> -> vector<256x8xf32>
    %33 = arith.addf %27, %32 : vector<256x8xf32>
    %34 = vector.extract_strided_slice %25 {offsets = [0, 0, 0], sizes = [16, 16, 4], strides = [1, 1, 1]} : vector<18x16x4xbf16> to vector<16x16x4xbf16>
    %35 = vector.shape_cast %34 : vector<16x16x4xbf16> to vector<256x4xbf16>
    %c1 = arith.constant 1 : index
    %c0_18 = arith.constant 0 : index
    %c0_19 = arith.constant 0 : index
    %36 = vector.load %arg5[%c1, %c0_18, %c0_19] : memref<9x4x8xbf16, #tpu.memory_space<vmem>>, vector<1x4x8xbf16>
    %37 = vector.shape_cast %36 : vector<1x4x8xbf16> to vector<4x8xbf16>
    %cst_20 = arith.constant dense<0.000000e+00> : vector<256x8xf32>
    %38 = tpu.matmul %35, %37, %cst_20 {dimension_numbers = #tpu.dot_dimension_numbers<[1], [0], [0], [1], [0, 0, 1, 1], [], []>} : vector<256x4xbf16>, vector<4x8xbf16>, vector<256x8xf32> -> vector<256x8xf32>
    %39 = arith.addf %33, %38 : vector<256x8xf32>
    %40 = vector.extract_strided_slice %26 {offsets = [0, 0, 0], sizes = [16, 16, 4], strides = [1, 1, 1]} : vector<18x16x4xbf16> to vector<16x16x4xbf16>
    %41 = vector.shape_cast %40 : vector<16x16x4xbf16> to vector<256x4xbf16>
    %c2 = arith.constant 2 : index
    %c0_21 = arith.constant 0 : index
    %c0_22 = arith.constant 0 : index
    %42 = vector.load %arg5[%c2, %c0_21, %c0_22] : memref<9x4x8xbf16, #tpu.memory_space<vmem>>, vector<1x4x8xbf16>
    %43 = vector.shape_cast %42 : vector<1x4x8xbf16> to vector<4x8xbf16>
    %cst_23 = arith.constant dense<0.000000e+00> : vector<256x8xf32>
    %44 = tpu.matmul %41, %43, %cst_23 {dimension_numbers = #tpu.dot_dimension_numbers<[1], [0], [0], [1], [0, 0, 1, 1], [], []>} : vector<256x4xbf16>, vector<4x8xbf16>, vector<256x8xf32> -> vector<256x8xf32>
    %45 = arith.addf %39, %44 : vector<256x8xf32>
    %46 = vector.extract_strided_slice %24 {offsets = [1, 0, 0], sizes = [16, 16, 4], strides = [1, 1, 1]} : vector<18x16x4xbf16> to vector<16x16x4xbf16>
    %47 = vector.shape_cast %46 : vector<16x16x4xbf16> to vector<256x4xbf16>
    %c3 = arith.constant 3 : index
    %c0_24 = arith.constant 0 : index
    %c0_25 = arith.constant 0 : index
    %48 = vector.load %arg5[%c3, %c0_24, %c0_25] : memref<9x4x8xbf16, #tpu.memory_space<vmem>>, vector<1x4x8xbf16>
    %49 = vector.shape_cast %48 : vector<1x4x8xbf16> to vector<4x8xbf16>
    %cst_26 = arith.constant dense<0.000000e+00> : vector<256x8xf32>
    %50 = tpu.matmul %47, %49, %cst_26 {dimension_numbers = #tpu.dot_dimension_numbers<[1], [0], [0], [1], [0, 0, 1, 1], [], []>} : vector<256x4xbf16>, vector<4x8xbf16>, vector<256x8xf32> -> vector<256x8xf32>
    %51 = arith.addf %45, %50 : vector<256x8xf32>
    %52 = vector.extract_strided_slice %25 {offsets = [1, 0, 0], sizes = [16, 16, 4], strides = [1, 1, 1]} : vector<18x16x4xbf16> to vector<16x16x4xbf16>
    %53 = vector.shape_cast %52 : vector<16x16x4xbf16> to vector<256x4xbf16>
    %c4 = arith.constant 4 : index
    %c0_27 = arith.constant 0 : index
    %c0_28 = arith.constant 0 : index
    %54 = vector.load %arg5[%c4, %c0_27, %c0_28] : memref<9x4x8xbf16, #tpu.memory_space<vmem>>, vector<1x4x8xbf16>
    %55 = vector.shape_cast %54 : vector<1x4x8xbf16> to vector<4x8xbf16>
    %cst_29 = arith.constant dense<0.000000e+00> : vector<256x8xf32>
    %56 = tpu.matmul %53, %55, %cst_29 {dimension_numbers = #tpu.dot_dimension_numbers<[1], [0], [0], [1], [0, 0, 1, 1], [], []>} : vector<256x4xbf16>, vector<4x8xbf16>, vector<256x8xf32> -> vector<256x8xf32>
    %57 = arith.addf %51, %56 : vector<256x8xf32>
    %58 = vector.extract_strided_slice %26 {offsets = [1, 0, 0], sizes = [16, 16, 4], strides = [1, 1, 1]} : vector<18x16x4xbf16> to vector<16x16x4xbf16>
    %59 = vector.shape_cast %58 : vector<16x16x4xbf16> to vector<256x4xbf16>
    %c5 = arith.constant 5 : index
    %c0_30 = arith.constant 0 : index
    %c0_31 = arith.constant 0 : index
    %60 = vector.load %arg5[%c5, %c0_30, %c0_31] : memref<9x4x8xbf16, #tpu.memory_space<vmem>>, vector<1x4x8xbf16>
    %61 = vector.shape_cast %60 : vector<1x4x8xbf16> to vector<4x8xbf16>
    %cst_32 = arith.constant dense<0.000000e+00> : vector<256x8xf32>
    %62 = tpu.matmul %59, %61, %cst_32 {dimension_numbers = #tpu.dot_dimension_numbers<[1], [0], [0], [1], [0, 0, 1, 1], [], []>} : vector<256x4xbf16>, vector<4x8xbf16>, vector<256x8xf32> -> vector<256x8xf32>
    %63 = arith.addf %57, %62 : vector<256x8xf32>
    %64 = vector.extract_strided_slice %24 {offsets = [2, 0, 0], sizes = [16, 16, 4], strides = [1, 1, 1]} : vector<18x16x4xbf16> to vector<16x16x4xbf16>
    %65 = vector.shape_cast %64 : vector<16x16x4xbf16> to vector<256x4xbf16>
    %c6 = arith.constant 6 : index
    %c0_33 = arith.constant 0 : index
    %c0_34 = arith.constant 0 : index
    %66 = vector.load %arg5[%c6, %c0_33, %c0_34] : memref<9x4x8xbf16, #tpu.memory_space<vmem>>, vector<1x4x8xbf16>
    %67 = vector.shape_cast %66 : vector<1x4x8xbf16> to vector<4x8xbf16>
    %cst_35 = arith.constant dense<0.000000e+00> : vector<256x8xf32>
    %68 = tpu.matmul %65, %67, %cst_35 {dimension_numbers = #tpu.dot_dimension_numbers<[1], [0], [0], [1], [0, 0, 1, 1], [], []>} : vector<256x4xbf16>, vector<4x8xbf16>, vector<256x8xf32> -> vector<256x8xf32>
    %69 = arith.addf %63, %68 : vector<256x8xf32>
    %70 = vector.extract_strided_slice %25 {offsets = [2, 0, 0], sizes = [16, 16, 4], strides = [1, 1, 1]} : vector<18x16x4xbf16> to vector<16x16x4xbf16>
    %71 = vector.shape_cast %70 : vector<16x16x4xbf16> to vector<256x4xbf16>
    %c7 = arith.constant 7 : index
    %c0_36 = arith.constant 0 : index
    %c0_37 = arith.constant 0 : index
    %72 = vector.load %arg5[%c7, %c0_36, %c0_37] : memref<9x4x8xbf16, #tpu.memory_space<vmem>>, vector<1x4x8xbf16>
    %73 = vector.shape_cast %72 : vector<1x4x8xbf16> to vector<4x8xbf16>
    %cst_38 = arith.constant dense<0.000000e+00> : vector<256x8xf32>
    %74 = tpu.matmul %71, %73, %cst_38 {dimension_numbers = #tpu.dot_dimension_numbers<[1], [0], [0], [1], [0, 0, 1, 1], [], []>} : vector<256x4xbf16>, vector<4x8xbf16>, vector<256x8xf32> -> vector<256x8xf32>
    %75 = arith.addf %69, %74 : vector<256x8xf32>
    %76 = vector.extract_strided_slice %26 {offsets = [2, 0, 0], sizes = [16, 16, 4], strides = [1, 1, 1]} : vector<18x16x4xbf16> to vector<16x16x4xbf16>
    %77 = vector.shape_cast %76 : vector<16x16x4xbf16> to vector<256x4xbf16>
    %c8 = arith.constant 8 : index
    %c0_39 = arith.constant 0 : index
    %c0_40 = arith.constant 0 : index
    %78 = vector.load %arg5[%c8, %c0_39, %c0_40] : memref<9x4x8xbf16, #tpu.memory_space<vmem>>, vector<1x4x8xbf16>
    %79 = vector.shape_cast %78 : vector<1x4x8xbf16> to vector<4x8xbf16>
    %cst_41 = arith.constant dense<0.000000e+00> : vector<256x8xf32>
    %80 = tpu.matmul %77, %79, %cst_41 {dimension_numbers = #tpu.dot_dimension_numbers<[1], [0], [0], [1], [0, 0, 1, 1], [], []>} : vector<256x4xbf16>, vector<4x8xbf16>, vector<256x8xf32> -> vector<256x8xf32>
    %81 = arith.addf %75, %80 : vector<256x8xf32>
    %cst_42 = arith.constant 0.000000e+00 : f32
    %82 = vector.broadcast %cst_42 : f32 to vector<256x8xf32>
    %83 = arith.maximumf %81, %82 : vector<256x8xf32>
    %84 = arith.truncf %83 : vector<256x8xf32> to vector<256x8xbf16>
    %c0_43 = arith.constant 0 : index
    %c0_44 = arith.constant 0 : index
    %85 = vector.load %arg6[%c0_43, %c0_44] : memref<8x4xbf16, #tpu.memory_space<vmem>>, vector<8x4xbf16>
    %cst_45 = arith.constant dense<0.000000e+00> : vector<256x4xf32>
    %86 = tpu.matmul %84, %85, %cst_45 {dimension_numbers = #tpu.dot_dimension_numbers<[1], [0], [0], [1], [0, 0, 1, 1], [], []>} : vector<256x8xbf16>, vector<8x4xbf16>, vector<256x4xf32> -> vector<256x4xf32>
    %87 = vector.shape_cast %1 : vector<16x16x4xf32> to vector<256x4xf32>
    %88 = arith.addf %87, %86 : vector<256x4xf32>
    %89 = vector.shape_cast %88 : vector<256x4xf32> to vector<1x16x16x4xf32>
    %c0_46 = arith.constant 0 : index
    %c0_47 = arith.constant 0 : index
    %c0_48 = arith.constant 0 : index
    %c0_49 = arith.constant 0 : index
    %90 = vector.load %arg7[%c0_46, %c0_47, %c0_48, %c0_49] : memref<1x16x16x4xf32, #tpu.memory_space<vmem>>, vector<1x16x16x4xf32>
    tpu.vector_store %arg7[%c0_46, %c0_47, %c0_48, %c0_49], %89 {strides = array<i32>} : memref<1x16x16x4xf32, #tpu.memory_space<vmem>>, vector<1x16x16x4xf32>,
    return
  }
  func.func @transform_0(%arg0: i32, %arg1: i32) -> (i32, i32, i32, i32) {
    %c0_i32 = arith.constant 0 : i32
    %c0_i32_0 = arith.constant 0 : i32
    %c0_i32_1 = arith.constant 0 : i32
    return %arg0, %arg1, %c0_i32, %c0_i32_0 : i32, i32, i32, i32
  }
  func.func @transform_1(%arg0: i32, %arg1: i32) -> (i32, i32, i32, i32) {
    %c16_i32 = arith.constant 16 : i32
    %0 = arith.muli %arg1, %c16_i32 : i32
    %c1_i32 = arith.constant 1 : i32
    %1 = arith.subi %0, %c1_i32 : i32
    %c0_i32 = arith.constant 0 : i32
    %2 = arith.maxsi %1, %c0_i32 : i32
    %c0_i32_0 = arith.constant 0 : i32
    %c0_i32_1 = arith.constant 0 : i32
    %c0_i32_2 = arith.constant 0 : i32
    return %arg0, %2, %c0_i32_0, %c0_i32_1 : i32, i32, i32, i32
  }
  func.func @transform_2(%arg0: i32, %arg1: i32) -> (i32, i32, i32, i32) {
    %c1_i32 = arith.constant 1 : i32
    %0 = arith.addi %arg1, %c1_i32 : i32
    %c16_i32 = arith.constant 16 : i32
    %1 = arith.muli %0, %c16_i32 : i32
    %c15_i32 = arith.constant 15 : i32
    %2 = arith.minsi %1, %c15_i32 : i32
    %c0_i32 = arith.constant 0 : i32
    %c0_i32_0 = arith.constant 0 : i32
    %c0_i32_1 = arith.constant 0 : i32
    return %arg0, %2, %c0_i32, %c0_i32_0 : i32, i32, i32, i32
  }
  func.func @transform_3(%arg0: i32, %arg1: i32) -> (i32, i32, i32) {
    %c0_i32 = arith.constant 0 : i32
    %c0_i32_0 = arith.constant 0 : i32
    %c0_i32_1 = arith.constant 0 : i32
    %c0_i32_2 = arith.constant 0 : i32
    return %c0_i32, %c0_i32_0, %c0_i32_1 : i32, i32, i32
  }
  func.func @transform_4(%arg0: i32, %arg1: i32) -> (i32, i32) {
    %c0_i32 = arith.constant 0 : i32
    %c0_i32_0 = arith.constant 0 : i32
    %c0_i32_1 = arith.constant 0 : i32
    return %c0_i32, %c0_i32_0 : i32, i32
  }
  func.func @transform_5(%arg0: i32, %arg1: i32) -> (i32, i32, i32, i32) {
    %c0_i32 = arith.constant 0 : i32
    %c0_i32_0 = arith.constant 0 : i32
    %c0_i32_1 = arith.constant 0 : i32
    return %arg0, %arg1, %c0_i32, %c0_i32_0 : i32, i32, i32, i32
  }
}

</mosaic_0001>

<bundles_post_ra>
// kernel: tpu_custom_call.1
= control target key start
LH: loop header
LB: loop body
LE: loop exit
PB: predicated region body
PF: predicated region fallthrough
CT: control target
= control target key end

     0   :  { %s3951_s18 = smov 0   ;;  %s3953_s19 = smov 0   ;;  %s5369_s0 = inlined_call_operand.vmem [shape: f32[2,16,16,4], index: 0, kind: input, shape index: {}]   ;;  %s5370_s1 = inlined_call_operand.vmem [shape: f32[2,16,16,4], index: 1, kind: input, shape index: {}]   ;;  %s5371_s2 = inlined_call_operand.vmem [shape: f32[2,16,16,4], index: 2, kind: input, shape index: {}]   ;;  %s5372_s3 = inlined_call_operand.vmem [shape: bf16[9,4,8], index: 3, kind: input, shape index: {}]   ;;  %s5373_s4 = inlined_call_operand.vmem [shape: bf16[8,4], index: 4, kind: input, shape index: {}]   ;;  %s5374_s5 = inlined_call_operand.vmem [shape: f32[2,16,16,4], index: 5, kind: output, shape index: {}]  }
   0x1   :  { %s3955_s20 = smov 0  }
   0x2 LB: > { %s27_s21 = sadd.s32 1, %s3915_s19  ;;  %p3136_p0 = scmp.ge.s32.totalorder %s3919_s20, 1  ;;  %s3919_s20 = sphi %s3955_s20, %s15_s20   ;;  %s3915_s19 = sphi %s3953_s19, %s5481_s19   ;;  %s3911_s18 = sphi %s3951_s18, %s5480_s18  }
   0x3   : > { %p29_p1 = scmp.ge.s32.totalorder %s27_s21, 2  ;;  %p273_p2 = scmp.lt.s32.totalorder %s3919_s20, 3 }
   0x5   : > { %s5483_s21 = smov (%p29_p1, %s27_s21), 0  ;;  %p274_p3 = pnand %p3136_p0, %p273_p2 }
   0x7   : > { %277 = sbr.rel (%p274_p3) target bundleno = 745 (0x2e9), region = 40 }
   0xc   : > { %v3145_v0 = vld [vmem:[%s5372_s3 + $0x2] sm:$0x3]  ;;  %vm838_vm0 = vcmask 1041408   ;;  %p338_p4 = scmp.lt.s32.totalorder %s3911_s18, 1  ;;  %v786_v2 = vld [vmem:[%s5372_s3] sm:$0x3] }
   0xd   : > { %3831 = vmatprep.subr.msk.bf16.mxu0 %vm838_vm0, %v3145_v0  ;;  %v840_v1 = vsel %vm838_vm0, %v3145_v0, 0  ;;  %v3178_v3 = vld [vmem:[%s5372_s3 + $0x4] sm:$0x3]  ;;  %3832 = vmatprep.subr.msk.bf16.mxu1 %vm838_vm0, %v786_v2  ;;  %v1052_v4 = vsel %vm838_vm0, %v786_v2, 0  ;;  %v3195_v5 = vld [vmem:[%s5372_s3 + $0x6] sm:$0x3] }
   0xe   : > { %3492 = vmatpush3.bf16.msra.mxu0 %v840_v1  ;;  %s5485_s18 = smov (!%p338_p4, %s3911_s18), 1  ;;  %3526 = vmatpush3.bf16.msra.mxu1 %v1052_v4  ;;  %vm514_vm1 = vcmask 1040384   ;;  %vm789_vm2 = vcmask 31744   ;;  %v1266_v25 = vsel %vm838_vm0, %v3178_v3, 0  ;;  %v4043_v35 = vld [vmem:[%s5372_s3 + $0x8] sm:$0x3] }
   0xf   : > { %3833 = vmatprep.subr.msk.bf16.mxu0 %vm838_vm0, %v3178_v3  ;;  %s3986_s30 = sshll.u32 %s5485_s18, 8  ;;  %3834 = vmatprep.subr.msk.bf16.mxu1 %vm838_vm0, %v3195_v5  ;;  %v1467_v46 = vsel %vm838_vm0, %v3195_v5, 0  ;;  %v4097_v63 = vld [vmem:[%s5372_s3 + $0xa] sm:$0x3]  ;;  %vm623_vm3 = vcmask 1046528   ;;  %vm2765_vm4 = vcmask 1043456  }
  0x10   : > { %s3993_s8 = scalar_lea.vmem %s5369_s0, %s3986_s30  ;;  %s360_s11 = scalar_lea.vmem %s5370_s1, %s3986_s30  ;;  %vm2716_vm5 = vcmask 64512  }
  0x11   : > { %v432_v6 = vld [vmem:[%s360_s11] sm:$0xff]  ;;  %v433_v7 = vld [vmem:[%s360_s11 + $0x8] sm:$0xff]  ;;  %v396_v13 = vld [vmem:[%s3993_s8 + $0x10] sm:$0xff]  ;;  %s3318_s25 = sadd.s32 240, %s3986_s30  ;;  %s5262_s10 = scalar_lea.vmem %s5374_s5, %s3986_s30 }
  0x12   : > { %v394_v8 = vld [vmem:[%s3993_s8] sm:$0xff]  ;;  %v435_v9 = vmul.f32 0.0, %v432_v6  ;;  %v436_v10 = vmul.f32 0.0, %v433_v7  ;;  %v395_v11 = vld [vmem:[%s3993_s8 + $0x8] sm:$0xff]  ;;  %v397_v14 = vld [vmem:[%s3993_s8 + $0x18] sm:$0xff]  ;;  %v4011_v18 = vmax.f32 %v396_v13, 0.0  ;;  %s377_s28 = scalar_lea.vmem %s5371_s2, %s3318_s25 }
  0x13   : > { %v4001_v12 = vmax.f32 %v394_v8, 0.0  ;;  %v4005_v15 = vmax.f32 %v395_v11, 0.0  ;;  %v4013_v19 = vmax.f32 %v397_v14, 0.0  ;;  %v398_v22 = vld [vmem:[%s3993_s8 + $0x20] sm:$0xff]  ;;  %v399_v23 = vld [vmem:[%s3993_s8 + $0x28] sm:$0xff]  ;;  %v400_v34 = vld [vmem:[%s3993_s8 + $0x30] sm:$0xff] }
  0x14   : > { %v4007_v16 = vmax.f32 %v435_v9, 0.0  ;;  %v4009_v17 = vmax.f32 %v436_v10, 0.0  ;;  %v4034_v31 = vmax.f32 %v398_v22, 0.0  ;;  %v4036_v32 = vmax.f32 %v399_v23, 0.0  ;;  %v401_v40 = vld [vmem:[%s3993_s8 + $0x38] sm:$0xff]  ;;  %v402_v44 = vld [vmem:[%s3993_s8 + $0x40] sm:$0xff] }
  0x15   : > { %v4017_v20 = vpack.c.bf16 %v4005_v15, %v4001_v12  ;;  %v518_v21 = vrot.slane %v4001_v12, 7  ;;  %v519_v28 = vrot.slane %v4005_v15, 7  ;;  %v4032_v30 = vpack.c.bf16 %v4013_v19, %v4011_v18  ;;  %v403_v45 = vld [vmem:[%s3993_s8 + $0x48] sm:$0xff]  ;;  %v404_v53 = vld [vmem:[%s3993_s8 + $0x50] sm:$0xff]  ;;  %v405_v54 = vld [vmem:[%s3993_s8 + $0x58] sm:$0xff] }
  0x16   : > { %v750_v24 = vpack.c.bf16 %v4009_v17, %v4007_v16  ;;  %v515_v26 = vrot.slane %v4007_v16, 7  ;;  %v516_v27 = vrot.slane %v4009_v17, 7  ;;  %v521_v33 = vrot.slane %v4011_v18, 7  ;;  %v406_v8 = vld [vmem:[%s3993_s8 + $0x60] sm:$0xff]  ;;  %v407_v9 = vld [vmem:[%s3993_s8 + $0x68] sm:$0xff]  ;;  %v408_v13 = vld [vmem:[%s3993_s8 + $0x70] sm:$0xff] }
  0x17   : > { %v606_v29 = vsel %vm514_vm1, 0.0, %v518_v21  ;;  %v520_v38 = vsel %vm514_vm1, %v518_v21, %v519_v28  ;;  %v522_v39 = vrot.slane %v4013_v19, 7  ;;  %v524_v48 = vrot.slane %v4034_v31, 7  ;;  %v409_v14 = vld [vmem:[%s3993_s8 + $0x78] sm:$0xff] }
  0x18   : > { %3493 = vmatprep.mubr.msk.bf16.mxu0 %vm789_vm2, %v750_v24  ;;  %v517_v36 = vsel %vm514_vm1, %v515_v26, %v516_v27  ;;  %v605_v37 = vsel %vm514_vm1, 0.0, %v515_v26  ;;  %v4052_v42 = vpack.c.bf16 %v520_v38, %v606_v29  ;;  %v607_v43 = vsel %vm514_vm1, 0.0, %v521_v33 }
  0x19   : > { %3494 = vmatmul.mubr.msk.bf16.vlgmr.msra.gmra.mxu0 %vm789_vm2, %v4017_v20  ;;  %v732_v41 = vpack.c.bf16 %v517_v36, %v605_v37  ;;  %v523_v47 = vsel %vm514_vm1, %v521_v33, %v522_v39  ;;  %v525_v49 = vrot.slane %v4036_v32, 7  ;;  %v4063_v50 = vmax.f32 %v400_v34, 0.0  ;;  %v410_v39 = vld [vmem:[%s3993_s8 + $0x80] sm:$0xff] }
  0x1a   : > { %3560 = vmatpush3.bf16.msra.mxu0 %v1266_v25  ;;  %3497 = vmatprep.mubr.msk.bf16.mxu0 %vm789_vm2, %v4032_v30  ;;  %v4068_v51 = vpack.c.bf16 %v523_v47, %v607_v43  ;;  %v4070_v52 = vmax.f32 %v401_v40, 0.0  ;;  %v4078_v55 = vpack.c.bf16 %v4036_v32, %v4034_v31  ;;  %v4080_v56 = vmax.f32 %v402_v44, 0.0  ;;  %v411_v40 = vld [vmem:[%s3993_s8 + $0x88] sm:$0xff]  ;;  %v412_v44 = vld [vmem:[%s3993_s8 + $0x90] sm:$0xff] }
  0x1b   : > { %3835 = vmatprep.subr.msk.bf16.mxu0 %vm838_vm0, %v4043_v35  ;;  %3527 = vmatprep.mubr.msk.bf16.mxu1 %vm789_vm2, %v732_v41  ;;  %v4082_v57 = vmax.f32 %v403_v45, 0.0  ;;  %v527_v58 = vrot.slane %v4063_v50, 7  ;;  %v526_v59 = vsel %vm514_vm1, %v524_v48, %v525_v49  ;;  %v608_v60 = vsel %vm514_vm1, 0.0, %v524_v48  ;;  %v413_v45 = vld [vmem:[%s3993_s8 + $0x98] sm:$0xff] }
  0x1c   : > { %3528 = vmatmul.mubr.msk.bf16.vlgmr.msra.gmra.mxu1 %vm789_vm2, %v4052_v42  ;;  %5400 = vst [vmem:[#allocation2_spill] sm:$0xff] %v4078_v55  ;;  %v4091_v61 = vpack.c.bf16 %v4070_v52, %v4063_v50  ;;  %v528_v62 = vrot.slane %v4070_v52, 7  ;;  %v4100_v1 = vmax.f32 %v404_v53, 0.0  ;;  %v4102_v2 = vmax.f32 %v405_v54, 0.0 }
  0x1d   : > { %3531 = vmatprep.mubr.msk.bf16.mxu1 %vm789_vm2, %v4068_v51  ;;  %3594 = vmatpush3.bf16.msra.mxu1 %v1467_v46  ;;  %v609_v0 = vsel %vm514_vm1, 0.0, %v527_v58  ;;  %v4109_v4 = vpack.c.bf16 %v526_v59, %v608_v60  ;;  %v530_v6 = vrot.slane %v4080_v56, 7  ;;  %v531_v7 = vrot.slane %v4082_v57, 7 }
  0x1e   : > { %5401 = vst [vmem:[#allocation3_spill] sm:$0xff] %v4091_v61  ;;  %3836 = vmatprep.subr.msk.bf16.mxu1 %vm838_vm0, %v4097_v63  ;;  %v529_v3 = vsel %vm514_vm1, %v527_v58, %v528_v62  ;;  %v533_v10 = vrot.slane %v4100_v1, 7  ;;  %v534_v11 = vrot.slane %v4102_v2, 7  ;;  %v4127_v21 = vpack.c.bf16 %v4082_v57, %v4080_v56 }
  0x1f   : > { %v4113_v5 = vpack.c.bf16 %v529_v3, %v609_v0  ;;  %v4129_v22 = vmax.f32 %v406_v8, 0.0  ;;  %v532_v23 = vsel %vm514_vm1, %v530_v6, %v531_v7  ;;  %v610_v24 = vsel %vm514_vm1, 0.0, %v530_v6  ;;  %v414_v8 = vld [vmem:[%s3993_s8 + $0xa0] sm:$0xff] }
  0x20   : > { %5402 = vst [vmem:[#allocation4_spill] sm:$0xff] %v4127_v21  ;;  %v4137_v25 = vpack.c.bf16 %v4102_v2, %v4100_v1  ;;  %v4139_v26 = vmax.f32 %v407_v9, 0.0  ;;  %v535_v27 = vsel %vm514_vm1, %v533_v10, %v534_v11  ;;  %v611_v28 = vsel %vm514_vm1, 0.0, %v533_v10  ;;  %v415_v9 = vld [vmem:[%s3993_s8 + $0xa8] sm:$0xff] }
  0x21   : > { %3498 = vmatmul.mubr.msk.bf16.gmra.mxu0 %vm789_vm2, %v4078_v55  ;;  %v4143_v29 = vmax.f32 %v408_v13, 0.0  ;;  %v4145_v33 = vmax.f32 %v409_v14, 0.0  ;;  %v4149_v34 = vpack.c.bf16 %v532_v23, %v610_v24  ;;  %v4153_v36 = vpack.c.bf16 %v535_v27, %v611_v28  ;;  %v416_v13 = vld [vmem:[%s3993_s8 + $0xb0] sm:$0xff]  ;;  %v417_v14 = vld [vmem:[%s3993_s8 + $0xb8] sm:$0xff] }
  0x22   : > { %3501 = vmatprep.mubr.msk.bf16.mxu0 %vm789_vm2, %v4091_v61  ;;  %5403 = vst [vmem:[#allocation5_spill] sm:$0xff] %v4137_v25  ;;  %v536_v37 = vrot.slane %v4129_v22, 7  ;;  %v537_v38 = vrot.slane %v4139_v26, 7  ;;  %v4167_v46 = vpack.c.bf16 %v4139_v26, %v4129_v22  ;;  %v4169_v47 = vmax.f32 %v410_v39, 0.0  ;;  %v425_v61 = vld [vmem:[%s3993_s8 + $0xf8] sm:$0xff] }
  0x23   : > { %v539_v41 = vrot.slane %v4143_v29, 7  ;;  %v540_v43 = vrot.slane %v4145_v33, 7  ;;  %v4177_v53 = vpack.c.bf16 %v4145_v33, %v4143_v29  ;;  %v4179_v54 = vmax.f32 %v411_v40, 0.0 }
  0x24   : > { %3532 = vmatmul.mubr.msk.bf16.gmra.mxu1 %vm789_vm2, %v4109_v4  ;;  %5404 = vst [vmem:[#allocation6_spill] sm:$0xff] %v4167_v46  ;;  %v538_v48 = vsel %vm514_vm1, %v536_v37, %v537_v38  ;;  %v612_v49 = vsel %vm514_vm1, 0.0, %v536_v37  ;;  %v4183_v60 = vmax.f32 %v412_v44, 0.0  ;;  %v4185_v62 = vmax.f32 %v413_v45, 0.0 }
  0x25   : > { %3535 = vmatprep.mubr.msk.bf16.mxu1 %vm789_vm2, %v4113_v5  ;;  %5405 = vst [vmem:[#allocation7_spill] sm:$0xff] %v4177_v53  ;;  %v541_v58 = vsel %vm514_vm1, %v539_v41, %v540_v43  ;;  %v613_v59 = vsel %vm514_vm1, 0.0, %v539_v41  ;;  %v4189_v0 = vpack.c.bf16 %v538_v48, %v612_v49  ;;  %v542_v6 = vrot.slane %v4169_v47, 7 }
  0x26   : > { %v4193_v3 = vpack.c.bf16 %v541_v58, %v613_v59  ;;  %v543_v7 = vrot.slane %v4179_v54, 7  ;;  %v545_v10 = vrot.slane %v4183_v60, 7  ;;  %v546_v11 = vrot.slane %v4185_v62, 7  ;;  %v418_v58 = vld [vmem:[%s3993_s8 + $0xc0] sm:$0xff]  ;;  %v419_v59 = vld [vmem:[%s3993_s8 + $0xc8] sm:$0xff] }
  0x27   : > { %v4207_v23 = vpack.c.bf16 %v4179_v54, %v4169_v47  ;;  %v4209_v24 = vmax.f32 %v414_v8, 0.0  ;;  %v614_v28 = vsel %vm514_vm1, 0.0, %v542_v6  ;;  %v4217_v37 = vpack.c.bf16 %v4185_v62, %v4183_v60  ;;  %v420_v8 = vld [vmem:[%s3993_s8 + $0xd0] sm:$0xff] }
  0x28   : > { %v544_v27 = vsel %vm514_vm1, %v542_v6, %v543_v7  ;;  %v4219_v38 = vmax.f32 %v415_v9, 0.0  ;;  %v547_v39 = vsel %vm514_vm1, %v545_v10, %v546_v11  ;;  %v615_v40 = vsel %vm514_vm1, 0.0, %v545_v10  ;;  %v421_v9 = vld [vmem:[%s3993_s8 + $0xd8] sm:$0xff] }
  0x29   : > { %3502 = vmatmul.mubr.msk.bf16.gmra.mxu0 %vm789_vm2, %v4127_v21  ;;  %5406 = vst [vmem:[#allocation8_spill] sm:$0xff] %v4207_v23  ;;  %5407 = vst [vmem:[#allocation9_spill] sm:$0xff] %v4217_v37  ;;  %v4223_v41 = vmax.f32 %v416_v13, 0.0  ;;  %v4225_v43 = vmax.f32 %v417_v14, 0.0  ;;  %v4229_v44 = vpack.c.bf16 %v544_v27, %v614_v28  ;;  %v4233_v45 = vpack.c.bf16 %v547_v39, %v615_v40  ;;  %v424_v21 = vld [vmem:[%s3993_s8 + $0xf0] sm:$0xff] }
  0x2a   : > { %3505 = vmatprep.mubr.msk.bf16.mxu0 %vm789_vm2, %v4137_v25  ;;  %v548_v48 = vrot.slane %v4209_v24, 7  ;;  %v549_v49 = vrot.slane %v4219_v38, 7  ;;  %v4247_v10 = vpack.c.bf16 %v4219_v38, %v4209_v24  ;;  %v4249_v11 = vmax.f32 %v418_v58, 0.0 }
  0x2b   : > { %v551_v6 = vrot.slane %v4223_v41, 7  ;;  %v552_v7 = vrot.slane %v4225_v43, 7  ;;  %v4257_v27 = vpack.c.bf16 %v4225_v43, %v4223_v41  ;;  %v4259_v28 = vmax.f32 %v419_v59, 0.0 }
  0x2c   : > { %3536 = vmatmul.mubr.msk.bf16.gmra.mxu1 %vm789_vm2, %v4149_v34  ;;  %5408 = vst [vmem:[#allocation10_spill] sm:$0xff] %v4247_v10  ;;  %v550_v13 = vsel %vm514_vm1, %v548_v48, %v549_v49  ;;  %v616_v14 = vsel %vm514_vm1, 0.0, %v548_v48  ;;  %v4263_v58 = vmax.f32 %v420_v8, 0.0  ;;  %v554_v59 = vrot.slane %v4249_v11, 7 }
  0x2d   : > { %3539 = vmatprep.mubr.msk.bf16.mxu1 %vm789_vm2, %v4153_v36  ;;  %5409 = vst [vmem:[#allocation11_spill] sm:$0xff] %v4257_v27  ;;  %v553_v39 = vsel %vm514_vm1, %v551_v6, %v552_v7  ;;  %v617_v40 = vsel %vm514_vm1, 0.0, %v551_v6  ;;  %v4269_v49 = vpack.c.bf16 %v550_v13, %v616_v14  ;;  %v555_v7 = vrot.slane %v4259_v28, 7  ;;  %v423_v6 = vld [vmem:[%s3993_s8 + $0xe8] sm:$0xff] }
  0x2e   : > { %v4273_v48 = vpack.c.bf16 %v553_v39, %v617_v40  ;;  %v557_v8 = vrot.slane %v4263_v58, 7  ;;  %v4285_v13 = vpack.c.bf16 %v4259_v28, %v4249_v11  ;;  %v618_v40 = vsel %vm514_vm1, 0.0, %v554_v59 }
  0x2f   : > { %v556_v39 = vsel %vm514_vm1, %v554_v59, %v555_v7  ;;  %v625_v25 = vrot.slane %v4009_v17, 1  ;;  %v4319_v55 = vmax.f32 %v425_v61, 0.0 }
  0x30   : > { %5410 = vst [vmem:[#allocation12_spill] sm:$0xff] %v4285_v13  ;;  %v4307_v59 = vpack.c.bf16 %v556_v39, %v618_v40  ;;  %v627_v39 = vrot.slane %v4001_v12, 1 }
  0x31   : > { %3506 = vmatmul.mubr.msk.bf16.gmra.mxu0 %vm789_vm2, %v4167_v46  ;;  %v714_v17 = vsel %vm623_vm3, %v625_v25, 0.0 }
  0x32   : > { %3509 = vmatprep.mubr.msk.bf16.mxu0 %vm789_vm2, %v4177_v53  ;;  %v624_v53 = vrot.slane %v4007_v16, 1 }
  0x34   : > { %3540 = vmatmul.mubr.msk.bf16.gmra.mxu1 %vm789_vm2, %v4189_v0 }
  0x35   : > { %3543 = vmatprep.mubr.msk.bf16.mxu1 %vm789_vm2, %v4193_v3 }
  0x39   : > { %3510 = vmatmul.mubr.msk.bf16.gmra.mxu0 %vm789_vm2, %v4207_v23  ;;  %v422_v23 = vld [vmem:[%s3993_s8 + $0xe0] sm:$0xff] }
  0x3a   : > { %3513 = vmatprep.mubr.msk.bf16.mxu0 %vm789_vm2, %v4217_v37  ;;  %v4265_v37 = vmax.f32 %v421_v9, 0.0  ;;  %v4287_v14 = vmax.f32 %v422_v23, 0.0  ;;  %v619_v23 = vsel %vm514_vm1, 0.0, %v557_v8 }
  0x3c   : > { %3544 = vmatmul.mubr.msk.bf16.gmra.mxu1 %vm789_vm2, %v4229_v44  ;;  %v558_v9 = vrot.slane %v4265_v37, 7  ;;  %v560_v16 = vrot.slane %v4287_v14, 7 }
  0x3d   : > { %3547 = vmatprep.mubr.msk.bf16.mxu1 %vm789_vm2, %v4233_v45 }
  0x3e   : > { %v559_v46 = vsel %vm514_vm1, %v557_v8, %v558_v9  ;;  %v626_v8 = vsel %vm623_vm3, %v624_v53, %v625_v25  ;;  %v4317_v9 = vmax.f32 %v424_v21, 0.0  ;;  %v628_v53 = vrot.slane %v4005_v15, 1 }
  0x3f   : > { %v4311_v7 = vpack.c.bf16 %v559_v46, %v619_v23  ;;  %v620_v12 = vsel %vm514_vm1, 0.0, %v560_v16  ;;  %v768_v21 = vpack.c.bf16 %v714_v17, %v626_v8  ;;  %v630_v25 = vrot.slane %v4011_v18, 1 }
  0x40   : > { %v4330_v40 = vpack.c.bf16 %v4319_v55, %v4317_v9  ;;  %v631_v23 = vrot.slane %v4013_v19, 1 }
  0x41   : > { %3514 = vmatmul.mubr.msk.bf16.gmra.mxu0 %vm789_vm2, %v4247_v10  ;;  %v4297_v10 = vmax.f32 %v423_v6, 0.0 }
  0x42   : > { %3517 = vmatprep.mubr.msk.bf16.mxu0 %vm789_vm2, %v4257_v27  ;;  %v4295_v27 = vpack.c.bf16 %v4265_v37, %v4263_v58  ;;  %5412 = vst [vmem:[#allocation14_spill] sm:$0xff] %v4330_v40  ;;  %v632_v19 = vsel %vm623_vm3, %v630_v25, %v631_v23  ;;  %v716_v17 = vsel %vm623_vm3, %v631_v23, 0.0  ;;  %v4371_v25 = vld [vmem:[%s5372_s3 + $0xc] sm:$0x3] }
  0x43   : > { %v561_v6 = vrot.slane %v4297_v10, 7  ;;  %v4326_v46 = vpack.c.bf16 %v4297_v10, %v4287_v14 }
  0x44   : > { %3548 = vmatmul.mubr.msk.bf16.gmra.mxu1 %vm789_vm2, %v4269_v49  ;;  %5411 = vst [vmem:[#allocation13_spill] sm:$0xff] %v4295_v27 }
  0x45   : > { %3551 = vmatprep.mubr.msk.bf16.mxu1 %vm789_vm2, %v4273_v48  ;;  %v562_v61 = vsel %vm514_vm1, %v560_v16, %v561_v6  ;;  %v629_v6 = vsel %vm623_vm3, %v627_v39, %v628_v53  ;;  %v715_v16 = vsel %vm623_vm3, %v628_v53, 0.0  ;;  %v4360_v39 = vpack.c.bf16 %v716_v17, %v632_v19 }
  0x46   : > { %v4343_v15 = vpack.c.bf16 %v562_v61, %v620_v12  ;;  %v4356_v61 = vpack.c.bf16 %v715_v16, %v629_v6  ;;  %v1668_v53 = vsel %vm838_vm0, %v4043_v35, 0  ;;  %v636_v12 = vrot.slane %v4063_v50, 1 }
  0x47   : > { %v1869_v50 = vsel %vm838_vm0, %v4097_v63, 0  ;;  %v639_v63 = vrot.slane %v4080_v56, 1  ;;  %v640_v16 = vrot.slane %v4082_v57, 1 }
  0x49   : > { %3518 = vmatmul.mubr.msk.bf16.gmra.mxu0 %vm789_vm2, %v4285_v13  ;;  %v673_v13 = vrot.slane %v4319_v55, 1  ;;  %v641_v19 = vsel %vm623_vm3, %v639_v63, %v640_v16  ;;  %v719_v56 = vsel %vm623_vm3, %v640_v16, 0.0 }
  0x4a   : > { %3521 = vmatprep.mubr.msk.bf16.mxu0 %vm789_vm2, %v4295_v27  ;;  %v672_v27 = vrot.slane %v4317_v9, 1 }
  0x4b   : > { %v730_v18 = vsel %vm623_vm3, %v673_v13, 0.0 }
  0x4c   : > { %3552 = vmatmul.mubr.msk.bf16.gmra.mxu1 %vm789_vm2, %v4307_v59  ;;  %v674_v8 = vsel %vm623_vm3, %v672_v27, %v673_v13  ;;  %v633_v27 = vrot.slane %v4034_v31, 1  ;;  %v634_v13 = vrot.slane %v4036_v32, 1 }
  0x4d   : > { %3555 = vmatprep.mubr.msk.bf16.mxu1 %vm789_vm2, %v4311_v7  ;;  %v4352_v40 = vpack.c.bf16 %v730_v18, %v674_v8  ;;  %v642_v8 = vrot.slane %v4100_v1, 1  ;;  %v643_v18 = vrot.slane %v4102_v2, 1  ;;  %v4414_v1 = vpack.c.bf16 %v719_v56, %v641_v19 }
  0x4e   : > { %v635_v31 = vsel %vm623_vm3, %v633_v27, %v634_v13  ;;  %v717_v32 = vsel %vm623_vm3, %v634_v13, 0.0  ;;  %v645_v27 = vrot.slane %v4129_v22, 1  ;;  %v646_v13 = vrot.slane %v4139_v26, 1 }
  0x4f   : > { %v4392_v23 = vpack.c.bf16 %v717_v32, %v635_v31  ;;  %v644_v57 = vsel %vm623_vm3, %v642_v8, %v643_v18  ;;  %v720_v17 = vsel %vm623_vm3, %v643_v18, 0.0  ;;  %v658_v18 = vrot.slane %v4219_v38, 1 }
  0x50   : > { %v4418_v2 = vpack.c.bf16 %v720_v17, %v644_v57  ;;  %v721_v31 = vsel %vm623_vm3, %v646_v13, 0.0  ;;  %v660_v19 = vrot.slane %v4223_v41, 1  ;;  %v661_v56 = vrot.slane %v4225_v43, 1 }
  0x51   : > { %3522 = vmatmul.mubr.msk.bf16.gmra.mxu0 %vm789_vm2, %v4326_v46  ;;  %v725_v17 = vsel %vm623_vm3, %v658_v18, 0.0  ;;  %v663_v43 = vrot.slane %v4249_v11, 1 }
  0x52   : > { %3561 = vmatprep.mubr.msk.bf16.mxu0 %vm789_vm2, %v768_v21  ;;  %v637_v21 = vrot.slane %v4070_v52, 1  ;;  %v4388_v52 = vld [vmem:[%s5372_s3 + $0xe] sm:$0x3] }
  0x54   : > { %3556 = vmatmul.mubr.msk.bf16.gmra.mxu1 %vm789_vm2, %v4343_v15  ;;  %v638_v35 = vsel %vm623_vm3, %v636_v12, %v637_v21  ;;  %v649_v12 = vrot.slane %v4145_v33, 1  ;;  %v651_v33 = vrot.slane %v4169_v47, 1 }
  0x55   : > { %3595 = vmatprep.mubr.msk.bf16.mxu1 %vm789_vm2, %v4052_v42  ;;  %v718_v42 = vsel %vm623_vm3, %v637_v21, 0.0  ;;  %v647_v21 = vsel %vm623_vm3, %v645_v27, %v646_v13  ;;  %v662_v27 = vsel %vm623_vm3, %v660_v19, %v661_v56  ;;  %v664_v13 = vrot.slane %v4259_v28, 1  ;;  %v5420_v19 = vld [vmem:[#allocation9_spill] sm:$0xff] }
  0x56   : > { %v4396_v6 = vpack.c.bf16 %v718_v42, %v638_v35  ;;  %v722_v22 = vsel %vm623_vm3, %v649_v12, 0.0  ;;  %v4434_v26 = vpack.c.bf16 %v721_v31, %v647_v21  ;;  %v652_v35 = vrot.slane %v4179_v54, 1 }
  0x57   : > { %v654_v42 = vrot.slane %v4183_v60, 1  ;;  %v665_v21 = vsel %vm623_vm3, %v663_v43, %v664_v13  ;;  %v727_v31 = vsel %vm623_vm3, %v664_v13, 0.0 }
  0x58   : > { %v653_v63 = vsel %vm623_vm3, %v651_v33, %v652_v35  ;;  %v723_v16 = vsel %vm623_vm3, %v652_v35, 0.0  ;;  %v4494_v28 = vpack.c.bf16 %v727_v31, %v665_v21 }
  0x59   : > { %3562 = vmatmul.mubr.msk.bf16.vlgmr.msra.gmra.mxu0 %vm789_vm2, %v4356_v61  ;;  %v4454_v54 = vpack.c.bf16 %v723_v16, %v653_v63 }
  0x5a   : > { %3628 = vmatpush3.bf16.msra.mxu0 %v1668_v53  ;;  %3565 = vmatprep.mubr.msk.bf16.mxu0 %vm789_vm2, %v4360_v39  ;;  %v648_v53 = vrot.slane %v4143_v29, 1 }
  0x5b   : > { %3837 = vmatprep.subr.msk.bf16.mxu0 %vm838_vm0, %v4371_v25 }
  0x5c   : > { %3596 = vmatmul.mubr.msk.bf16.vlgmr.msra.gmra.mxu1 %vm789_vm2, %v4068_v51  ;;  %v650_v32 = vsel %vm623_vm3, %v648_v53, %v649_v12  ;;  %v666_v53 = vrot.slane %v4263_v58, 1  ;;  %v667_v12 = vrot.slane %v4265_v37, 1  ;;  %v669_v58 = vrot.slane %v4287_v14, 1 }
  0x5d   : > { %3599 = vmatprep.mubr.msk.bf16.mxu1 %vm789_vm2, %v4109_v4  ;;  %3662 = vmatpush3.bf16.msra.mxu1 %v1869_v50  ;;  %v4438_v29 = vpack.c.bf16 %v722_v22, %v650_v32  ;;  %v655_v50 = vrot.slane %v4185_v62, 1  ;;  %v657_v62 = vrot.slane %v4209_v24, 1  ;;  %v726_v24 = vsel %vm623_vm3, %v661_v56, 0.0  ;;  %v5421_v56 = vld [vmem:[#allocation10_spill] sm:$0xff] }
  0x5e   : > { %3838 = vmatprep.subr.msk.bf16.mxu1 %vm838_vm0, %v4388_v52  ;;  %v4478_v41 = vpack.c.bf16 %v726_v24, %v662_v27  ;;  %v668_v32 = vsel %vm623_vm3, %v666_v53, %v667_v12  ;;  %v728_v11 = vsel %vm623_vm3, %v667_v12, 0.0  ;;  %v670_v22 = vrot.slane %v4297_v10, 1  ;;  %v437_v27 = vld [vmem:[%s377_s28] sm:$0xff]  ;;  %v438_v24 = vld [vmem:[%s377_s28 + $0x8] sm:$0xff]  ;;  %v5424_v53 = vld [vmem:[#allocation13_spill] sm:$0xff] }
  0x5f   : > { %v656_v8 = vsel %vm623_vm3, %v654_v42, %v655_v50  ;;  %v724_v47 = vsel %vm623_vm3, %v655_v50, 0.0  ;;  %v659_v57 = vsel %vm623_vm3, %v657_v62, %v658_v18  ;;  %v4498_v37 = vpack.c.bf16 %v728_v11, %v668_v32  ;;  %v5418_v62 = vld [vmem:[#allocation7_spill] sm:$0xff]  ;;  %v5419_v18 = vld [vmem:[#allocation8_spill] sm:$0xff] }
  0x60   : > { %v4458_v60 = vpack.c.bf16 %v724_v47, %v656_v8  ;;  %v4474_v38 = vpack.c.bf16 %v725_v17, %v659_v57  ;;  %v671_v33 = vsel %vm623_vm3, %v669_v58, %v670_v22  ;;  %v729_v35 = vsel %vm623_vm3, %v670_v22, 0.0  ;;  %v5413_v8 = vld [vmem:[#allocation2_spill] sm:$0xff]  ;;  %v5422_v57 = vld [vmem:[#allocation11_spill] sm:$0xff]  ;;  %v5423_v17 = vld [vmem:[#allocation12_spill] sm:$0xff] }
  0x61   : > { %3566 = vmatmul.mubr.msk.bf16.gmra.mxu0 %vm789_vm2, %v4392_v23  ;;  %v563_v42 = vrot.slane %v4317_v9, 7  ;;  %v564_v50 = vrot.slane %v4319_v55, 7  ;;  %v4512_v14 = vpack.c.bf16 %v729_v35, %v671_v33  ;;  %v2070_v55 = vsel %vm838_vm0, %v4371_v25, 0  ;;  %v3280_v9 = vld [vmem:[%s5372_s3 + $0x10] sm:$0x3]  ;;  %v5417_v47 = vld [vmem:[#allocation6_spill] sm:$0xff] }
  0x62   : > { %3569 = vmatprep.mubr.msk.bf16.mxu0 %vm789_vm2, %v4396_v6  ;;  %v5415_v25 = vld [vmem:[#allocation4_spill] sm:$0xff]  ;;  %v440_v43 = vmul.f32 0.0, %v437_v27  ;;  %v441_v13 = vmul.f32 0.0, %v438_v24  ;;  %v5425_v33 = vld [vmem:[#allocation14_spill] sm:$0xff]  ;;  %v2472_v35 = vsel %vm838_vm0, %v3280_v9, 0 }
  0x63   : > { %v565_v10 = vsel %vm514_vm1, %v563_v42, %v564_v50  ;;  %v621_v63 = vsel %vm514_vm1, 0.0, %v563_v42 }
  0x64   : > { %3600 = vmatmul.mubr.msk.bf16.gmra.mxu1 %vm789_vm2, %v4113_v5  ;;  %v4520_v16 = vpack.c.bf16 %v565_v10, %v621_v63  ;;  %v4592_v12 = vmax.f32 %v440_v43, 0.0  ;;  %v4594_v21 = vmax.f32 %v441_v13, 0.0 }
  0x65   : > { %3603 = vmatprep.mubr.msk.bf16.mxu1 %vm789_vm2, %v4149_v34 }
  0x66   : > { %v675_v31 = vrot.slane %v4592_v12, 1  ;;  %v676_v32 = vrot.slane %v4594_v21, 1 }
  0x68   : > { %v4603_v11 = vsel %vm623_vm3, %v675_v31, %v676_v32  ;;  %v4606_v58 = vsel %vm623_vm3, %v676_v32, 0.0 }
  0x69   : > { %3570 = vmatmul.mubr.msk.bf16.gmra.mxu0 %vm789_vm2, %v4414_v1  ;;  %v785_v22 = vpack.c.bf16 %v4606_v58, %v4603_v11 }
  0x6a   : > { %3573 = vmatprep.mubr.msk.bf16.mxu0 %vm789_vm2, %v4418_v2 }
  0x6c   : > { %3604 = vmatmul.mubr.msk.bf16.gmra.mxu1 %vm789_vm2, %v4153_v36 }
  0x6d   : > { %3607 = vmatprep.mubr.msk.bf16.mxu1 %vm789_vm2, %v4189_v0 }
  0x71   : > { %3574 = vmatmul.mubr.msk.bf16.gmra.mxu0 %vm789_vm2, %v4434_v26 }
  0x72   : > { %3577 = vmatprep.mubr.msk.bf16.mxu0 %vm789_vm2, %v4438_v29 }
  0x74   : > { %3608 = vmatmul.mubr.msk.bf16.gmra.mxu1 %vm789_vm2, %v4193_v3 }
  0x75   : > { %3611 = vmatprep.mubr.msk.bf16.mxu1 %vm789_vm2, %v4229_v44 }
  0x79   : > { %3578 = vmatmul.mubr.msk.bf16.gmra.mxu0 %vm789_vm2, %v4454_v54 }
  0x7a   : > { %3581 = vmatprep.mubr.msk.bf16.mxu0 %vm789_vm2, %v4458_v60 }
  0x7c   : > { %3612 = vmatmul.mubr.msk.bf16.gmra.mxu1 %vm789_vm2, %v4233_v45 }
  0x7d   : > { %3615 = vmatprep.mubr.msk.bf16.mxu1 %vm789_vm2, %v4269_v49 }
  0x81   : > { %3582 = vmatmul.mubr.msk.bf16.gmra.mxu0 %vm789_vm2, %v4474_v38 }
  0x82   : > { %3585 = vmatprep.mubr.msk.bf16.mxu0 %vm789_vm2, %v4478_v41 }
  0x84   : > { %3616 = vmatmul.mubr.msk.bf16.gmra.mxu1 %vm789_vm2, %v4273_v48 }
  0x85   : > { %3619 = vmatprep.mubr.msk.bf16.mxu1 %vm789_vm2, %v4307_v59 }
  0x89   : > { %3586 = vmatmul.mubr.msk.bf16.gmra.mxu0 %vm789_vm2, %v4494_v28 }
  0x8a   : > { %3589 = vmatprep.mubr.msk.bf16.mxu0 %vm789_vm2, %v4498_v37 }
  0x8c   : > { %3620 = vmatmul.mubr.msk.bf16.gmra.mxu1 %vm789_vm2, %v4311_v7 }
  0x8d   : > { %3623 = vmatprep.mubr.msk.bf16.mxu1 %vm789_vm2, %v4343_v15 }
  0x91   : > { %3590 = vmatmul.mubr.msk.bf16.gmra.mxu0 %vm789_vm2, %v4512_v14 }
  0x92   : > { %3629 = vmatprep.mubr.msk.bf16.mxu0 %vm789_vm2, %v4017_v20  ;;  %v2271_v20 = vsel %vm838_vm0, %v4388_v52, 0  ;;  %v5416_v52 = vld [vmem:[#allocation5_spill] sm:$0xff] }
  0x94   : > { %3624 = vmatmul.mubr.msk.bf16.gmra.mxu1 %vm789_vm2, %v4520_v16 }
  0x95   : > { %3663 = vmatprep.mubr.msk.bf16.mxu1 %vm789_vm2, %v4356_v61  ;;  %v5414_v61 = vld [vmem:[#allocation3_spill] sm:$0xff] }
  0x99   : > { %3630 = vmatmul.mubr.msk.bf16.vlgmr.msra.gmra.mxu0 %vm789_vm2, %v4032_v30 }
  0x9a   : > { %3696 = vmatpush3.bf16.msra.mxu0 %v2070_v55  ;;  %3633 = vmatprep.mubr.msk.bf16.mxu0 %vm789_vm2, %v5413_v8 }
  0x9b   : > { %3839 = vmatprep.subr.msk.bf16.mxu0 %vm838_vm0, %v3280_v9 }
  0x9c   : > { %3664 = vmatmul.mubr.msk.bf16.vlgmr.msra.gmra.mxu1 %vm789_vm2, %v4360_v39 }
  0x9d   : > { %3667 = vmatprep.mubr.msk.bf16.mxu1 %vm789_vm2, %v4392_v23  ;;  %3730 = vmatpush3.bf16.msra.mxu1 %v2271_v20 }
  0xa1   : > { %3634 = vmatmul.mubr.msk.bf16.gmra.mxu0 %vm789_vm2, %v5414_v61 }
  0xa2   : > { %3637 = vmatprep.mubr.msk.bf16.mxu0 %vm789_vm2, %v5415_v25 }
  0xa4   : > { %3668 = vmatmul.mubr.msk.bf16.gmra.mxu1 %vm789_vm2, %v4396_v6 }
  0xa5   : > { %3671 = vmatprep.mubr.msk.bf16.mxu1 %vm789_vm2, %v4414_v1 }
  0xa9   : > { %3638 = vmatmul.mubr.msk.bf16.gmra.mxu0 %vm789_vm2, %v5416_v52 }
  0xaa   : > { %3641 = vmatprep.mubr.msk.bf16.mxu0 %vm789_vm2, %v5417_v47 }
  0xac   : > { %3672 = vmatmul.mubr.msk.bf16.gmra.mxu1 %vm789_vm2, %v4418_v2 }
  0xad   : > { %3675 = vmatprep.mubr.msk.bf16.mxu1 %vm789_vm2, %v4434_v26 }
  0xb1   : > { %3642 = vmatmul.mubr.msk.bf16.gmra.mxu0 %vm789_vm2, %v5418_v62 }
  0xb2   : > { %3645 = vmatprep.mubr.msk.bf16.mxu0 %vm789_vm2, %v5419_v18 }
  0xb4   : > { %3676 = vmatmul.mubr.msk.bf16.gmra.mxu1 %vm789_vm2, %v4438_v29 }
  0xb5   : > { %3679 = vmatprep.mubr.msk.bf16.mxu1 %vm789_vm2, %v4454_v54 }
  0xb9   : > { %3646 = vmatmul.mubr.msk.bf16.gmra.mxu0 %vm789_vm2, %v5420_v19 }
  0xba   : > { %3649 = vmatprep.mubr.msk.bf16.mxu0 %vm789_vm2, %v5421_v56 }
  0xbc   : > { %3680 = vmatmul.mubr.msk.bf16.gmra.mxu1 %vm789_vm2, %v4458_v60 }
  0xbd   : > { %3683 = vmatprep.mubr.msk.bf16.mxu1 %vm789_vm2, %v4474_v38 }
  0xc1   : > { %3650 = vmatmul.mubr.msk.bf16.gmra.mxu0 %vm789_vm2, %v5422_v57 }
  0xc2   : > { %3653 = vmatprep.mubr.msk.bf16.mxu0 %vm789_vm2, %v5423_v17 }
  0xc4   : > { %3684 = vmatmul.mubr.msk.bf16.gmra.mxu1 %vm789_vm2, %v4478_v41 }
  0xc5   : > { %3687 = vmatprep.mubr.msk.bf16.mxu1 %vm789_vm2, %v4494_v28 }
  0xc9   : > { %3654 = vmatmul.mubr.msk.bf16.gmra.mxu0 %vm789_vm2, %v5424_v53 }
  0xca   : > { %3657 = vmatprep.mubr.msk.bf16.mxu0 %vm789_vm2, %v4326_v46 }
  0xcc   : > { %3688 = vmatmul.mubr.msk.bf16.gmra.mxu1 %vm789_vm2, %v4498_v37 }
  0xcd   : > { %3691 = vmatprep.mubr.msk.bf16.mxu1 %vm789_vm2, %v4512_v14 }
  0xd1   : > { %3658 = vmatmul.mubr.msk.bf16.gmra.mxu0 %vm789_vm2, %v5425_v33 }
  0xd2   : > { %3697 = vmatprep.mubr.msk.bf16.mxu0 %vm789_vm2, %v4068_v51 }
  0xd4   : > { %3692 = vmatmul.mubr.msk.bf16.gmra.mxu1 %vm789_vm2, %v4352_v40 }
  0xd5   : > { %3731 = vmatprep.mubr.msk.bf16.mxu1 %vm789_vm2, %v4032_v30 }
  0xd9   : > { %v3495_v42 = vpop.f32.mrf.mxu0  ;;  %3698 = vmatmul.mubr.msk.bf16.vlgmr.msra.gmra.mxu0 %vm789_vm2, %v4109_v4 }
  0xda   : > { %3764 = vmatpush3.bf16.msra.mxu0 %v2472_v35  ;;  %3701 = vmatprep.mubr.msk.bf16.mxu0 %vm789_vm2, %v4113_v5 }
  0xdb   : > { %v876_v50 = vpop.f32.mrf.mxu0 }
  0xdc   : > { %v3529_v10 = vpop.f32.mrf.mxu1  ;;  %3732 = vmatmul.mubr.msk.bf16.vlgmr.msra.gmra.mxu1 %vm789_vm2, %v5413_v8 }
  0xdd   : > { %v3496_v51 = vpop.f32.mrf.mxu0  ;;  %v4625_v63 = vadd.f32 %v3529_v10, %v3495_v42  ;;  %3735 = vmatprep.mubr.msk.bf16.mxu1 %vm789_vm2, %v5414_v61 }
  0xde   : > { %v1088_v30 = vpop.f32.mrf.mxu1 }
  0xdf   : > { %v879_v55 = vpop.f32.mrf.mxu0  ;;  %v4629_v9 = vadd.f32 %v1088_v30, %v876_v50 }
  0xe0   : > { %v3530_v4 = vpop.f32.mrf.mxu1 }
  0xe1   : > { %v3499_v20 = vpop.f32.mrf.mxu0  ;;  %3702 = vmatmul.mubr.msk.bf16.gmra.mxu0 %vm789_vm2, %v4149_v34  ;;  %v4633_v5 = vadd.f32 %v3530_v4, %v3496_v51 }
  0xe2   : > { %3705 = vmatprep.mubr.msk.bf16.mxu0 %vm789_vm2, %v4153_v36  ;;  %v1091_v8 = vpop.f32.mrf.mxu1 }
  0xe3   : > { %v892_v27 = vpop.f32.mrf.mxu0  ;;  %v4637_v24 = vadd.f32 %v1091_v8, %v879_v55 }
  0xe4   : > { %v3533_v43 = vpop.f32.mrf.mxu1  ;;  %3736 = vmatmul.mubr.msk.bf16.gmra.mxu1 %vm789_vm2, %v5415_v25 }
  0xe5   : > { %v3500_v61 = vpop.f32.mrf.mxu0  ;;  %v4641_v13 = vadd.f32 %v3533_v43, %v3499_v20  ;;  %3739 = vmatprep.mubr.msk.bf16.mxu1 %vm789_vm2, %v5416_v52 }
  0xe6   : > { %v1104_v34 = vpop.f32.mrf.mxu1 }
  0xe7   : > { %v895_v31 = vpop.f32.mrf.mxu0  ;;  %v4645_v32 = vadd.f32 %v1104_v34, %v892_v27 }
  0xe8   : > { %v3534_v35 = vpop.f32.mrf.mxu1 }
  0xe9   : > { %v3503_v36 = vpop.f32.mrf.mxu0  ;;  %3706 = vmatmul.mubr.msk.bf16.gmra.mxu0 %vm789_vm2, %v4189_v0  ;;  %v4649_v42 = vadd.f32 %v3534_v35, %v3500_v61 }
  0xea   : > { %3709 = vmatprep.mubr.msk.bf16.mxu0 %vm789_vm2, %v4193_v3  ;;  %v1107_v25 = vpop.f32.mrf.mxu1 }
  0xeb   : > { %v908_v50 = vpop.f32.mrf.mxu0  ;;  %v4653_v10 = vadd.f32 %v1107_v25, %v895_v31 }
  0xec   : > { %v3537_v51 = vpop.f32.mrf.mxu1  ;;  %3740 = vmatmul.mubr.msk.bf16.gmra.mxu1 %vm789_vm2, %v5417_v47 }
  0xed   : > { %v3504_v52 = vpop.f32.mrf.mxu0  ;;  %v4657_v30 = vadd.f32 %v3537_v51, %v3503_v36  ;;  %3743 = vmatprep.mubr.msk.bf16.mxu1 %vm789_vm2, %v5418_v62 }
  0xee   : > { %v1120_v0 = vpop.f32.mrf.mxu1 }
  0xef   : > { %v911_v55 = vpop.f32.mrf.mxu0  ;;  %v4661_v4 = vadd.f32 %v1120_v0, %v908_v50 }
  0xf0   : > { %v3538_v20 = vpop.f32.mrf.mxu1 }
  0xf1   : > { %v3507_v3 = vpop.f32.mrf.mxu0  ;;  %3710 = vmatmul.mubr.msk.bf16.gmra.mxu0 %vm789_vm2, %v4229_v44  ;;  %v4665_v8 = vadd.f32 %v3538_v20, %v3504_v52 }
  0xf2   : > { %3713 = vmatprep.mubr.msk.bf16.mxu0 %vm789_vm2, %v4233_v45  ;;  %v1123_v47 = vpop.f32.mrf.mxu1 }
  0xf3   : > { %v924_v27 = vpop.f32.mrf.mxu0  ;;  %v4669_v43 = vadd.f32 %v1123_v47, %v911_v55 }
  0xf4   : > { %v3541_v61 = vpop.f32.mrf.mxu1  ;;  %3744 = vmatmul.mubr.msk.bf16.gmra.mxu1 %vm789_vm2, %v5419_v18 }
  0xf5   : > { %v3508_v62 = vpop.f32.mrf.mxu0  ;;  %v4673_v34 = vadd.f32 %v3541_v61, %v3507_v3  ;;  %3747 = vmatprep.mubr.msk.bf16.mxu1 %vm789_vm2, %v5420_v19 }
  0xf6   : > { %v1136_v44 = vpop.f32.mrf.mxu1 }
  0xf7   : > { %v927_v31 = vpop.f32.mrf.mxu0  ;;  %v4677_v35 = vadd.f32 %v1136_v44, %v924_v27  ;;  %v567_v44 = vrot.slane %v4594_v21, 7 }
  0xf8   : > { %v3542_v36 = vpop.f32.mrf.mxu1 }
  0xf9   : > { %v3511_v45 = vpop.f32.mrf.mxu0  ;;  %3714 = vmatmul.mubr.msk.bf16.gmra.mxu0 %vm789_vm2, %v4269_v49  ;;  %v4681_v25 = vadd.f32 %v3542_v36, %v3508_v62 }
  0xfa   : > { %3717 = vmatprep.mubr.msk.bf16.mxu0 %vm789_vm2, %v4273_v48  ;;  %v1139_v18 = vpop.f32.mrf.mxu1 }
  0xfb   : > { %v940_v50 = vpop.f32.mrf.mxu0  ;;  %v4685_v51 = vadd.f32 %v1139_v18, %v927_v31 }
  0xfc   : > { %v3545_v52 = vpop.f32.mrf.mxu1  ;;  %3748 = vmatmul.mubr.msk.bf16.gmra.mxu1 %vm789_vm2, %v5421_v56 }
  0xfd   : > { %v3512_v19 = vpop.f32.mrf.mxu0  ;;  %v4689_v0 = vadd.f32 %v3545_v52, %v3511_v45  ;;  %3751 = vmatprep.mubr.msk.bf16.mxu1 %vm789_vm2, %v5422_v57 }
  0xfe   : > { %v1152_v49 = vpop.f32.mrf.mxu1 }
  0xff   : > { %v4693_v55 = vpop.f32.mrf.mxu0  ;;  %v4695_v20 = vadd.f32 %v1152_v49, %v940_v50 }
 0x100   : > { %v3546_v48 = vpop.f32.mrf.mxu1 }
 0x101   : > { %v3515_v3 = vpop.f32.mrf.mxu0  ;;  %3718 = vmatmul.mubr.msk.bf16.gmra.mxu0 %vm789_vm2, %v4307_v59  ;;  %v4699_v47 = vadd.f32 %v3546_v48, %v3512_v19  ;;  %v566_v59 = vrot.slane %v4592_v12, 7 }
 0x102   : > { %3721 = vmatprep.mubr.msk.bf16.mxu0 %vm789_vm2, %v4311_v7  ;;  %v4703_v56 = vpop.f32.mrf.mxu1 }
 0x103   : > { %v956_v27 = vpop.f32.mrf.mxu0  ;;  %v622_v50 = vsel %vm514_vm1, 0.0, %v566_v59 }
 0x104   : > { %v3549_v61 = vpop.f32.mrf.mxu1  ;;  %3752 = vmatmul.mubr.msk.bf16.gmra.mxu1 %vm789_vm2, %v5423_v17 }
 0x105   : > { %v3516_v57 = vpop.f32.mrf.mxu0  ;;  %v4707_v62 = vadd.f32 %v3549_v61, %v3515_v3  ;;  %3755 = vmatprep.mubr.msk.bf16.mxu1 %vm789_vm2, %v5424_v53  ;;  %v568_v53 = vsel %vm514_vm1, %v566_v59, %v567_v44  ;;  %v767_v44 = vpack.c.bf16 %v4594_v21, %v4592_v12 }
 0x106   : > { %v1168_v31 = vpop.f32.mrf.mxu1  ;;  %v749_v3 = vpack.c.bf16 %v568_v53, %v622_v50 }
 0x107   : > { %v4713_v36 = vpop.f32.mrf.mxu0  ;;  %v4715_v7 = vadd.f32 %v1168_v31, %v956_v27 }
 0x108   : > { %v3550_v45 = vpop.f32.mrf.mxu1 }
 0x109   : > { %v3519_v18 = vpop.f32.mrf.mxu0  ;;  %3722 = vmatmul.mubr.msk.bf16.gmra.mxu0 %vm789_vm2, %v4343_v15  ;;  %v4719_v17 = vadd.f32 %v3550_v45, %v3516_v57 }
 0x10a   : > { %3725 = vmatprep.mubr.msk.bf16.mxu0 %vm789_vm2, %v4520_v16  ;;  %v4725_v52 = vpop.f32.mrf.mxu1 }
 0x10b   : > { %v972_v19 = vpop.f32.mrf.mxu0 }
 0x10c   : > { %v3553_v49 = vpop.f32.mrf.mxu1  ;;  %3756 = vmatmul.mubr.msk.bf16.gmra.mxu1 %vm789_vm2, %v4326_v46 }
 0x10d   : > { %v3520_v48 = vpop.f32.mrf.mxu0  ;;  %v4729_v27 = vadd.f32 %v3553_v49, %v3519_v18  ;;  %3759 = vmatprep.mubr.msk.bf16.mxu1 %vm789_vm2, %v5425_v33 }
 0x10e   : > { %v1184_v15 = vpop.f32.mrf.mxu1 }
 0x10f   : > { %v4733_v16 = vpop.f32.mrf.mxu0  ;;  %v4735_v61 = vadd.f32 %v1184_v15, %v972_v19 }
 0x110   : > { %v3554_v57 = vpop.f32.mrf.mxu1 }
 0x111   : > { %v3523_v59 = vpop.f32.mrf.mxu0  ;;  %3726 = vmatmul.mubr.msk.bf16.gmra.mxu0 %vm789_vm2, %v749_v3  ;;  %v4740_v46 = vadd.f32 %v3554_v57, %v3520_v48 }
 0x112   : > { %3765 = vmatprep.mubr.msk.bf16.mxu0 %vm789_vm2, %v4360_v39  ;;  %v4744_v31 = vpop.f32.mrf.mxu1 }
 0x113   : > { %v988_v33 = vpop.f32.mrf.mxu0 }
 0x114   : > { %v3557_v45 = vpop.f32.mrf.mxu1  ;;  %3760 = vmatmul.mubr.msk.bf16.gmra.mxu1 %vm789_vm2, %v767_v44 }
 0x115   : > { %v3524_v18 = vpop.f32.mrf.mxu0  ;;  %v4747_v53 = vadd.f32 %v3557_v45, %v3523_v59 }
 0x116   : > { %v1200_v50 = vpop.f32.mrf.mxu1 }
 0x117   : > { %v4749_v19 = vpop.f32.mrf.mxu0  ;;  %v4751_v49 = vadd.f32 %v1200_v50, %v988_v33 }
 0x118   : > { %v3558_v12 = vpop.f32.mrf.mxu1 }
 0x119   : > { %v3563_v21 = vpop.f32.mrf.mxu0  ;;  %3766 = vmatmul.mubr.msk.bf16.vlgmr.msra.gmra.mxu0 %vm789_vm2, %v4392_v23  ;;  %v4755_v39 = vadd.f32 %v3558_v12, %v3524_v18 }
 0x11a   : > { %v1431_v48 = vadd.f32 %v3563_v21, %v4625_v63  ;;  %3769 = vmatprep.mubr.msk.bf16.mxu0 %vm789_vm2, %v4396_v6  ;;  %v4760_v3 = vpop.f32.mrf.mxu1 }
 0x11b   : > { %v1302_v15 = vpop.f32.mrf.mxu0 }
 0x11c   : > { %v1429_v57 = vadd.f32 %v1302_v15, %v4629_v9  ;;  %v3597_v59 = vpop.f32.mrf.mxu1 }
 0x11d   : > { %v3564_v44 = vpop.f32.mrf.mxu0  ;;  %v4763_v33 = vadd.f32 %v3597_v59, %v1431_v48 }
 0x11e   : > { %v1432_v45 = vadd.f32 %v3564_v44, %v4633_v5  ;;  %v1503_v50 = vpop.f32.mrf.mxu1 }
 0x11f   : > { %v1305_v23 = vpop.f32.mrf.mxu0  ;;  %v4766_v18 = vadd.f32 %v1503_v50, %v1429_v57 }
 0x120   : > { %v4769_v63 = vadd.f32 %v1305_v23, %v4637_v24  ;;  %v3598_v12 = vpop.f32.mrf.mxu1 }
 0x121   : > { %v3567_v6 = vpop.f32.mrf.mxu0  ;;  %3770 = vmatmul.mubr.msk.bf16.gmra.mxu0 %vm789_vm2, %v4414_v1  ;;  %v4773_v21 = vadd.f32 %v3598_v12, %v1432_v45 }
 0x122   : > { %v1435_v9 = vadd.f32 %v3567_v6, %v4641_v13  ;;  %3773 = vmatprep.mubr.msk.bf16.mxu0 %vm789_vm2, %v4418_v2  ;;  %v4778_v5 = vpop.f32.mrf.mxu1  ;;  %v2715_v2 = vld [vmem:[%s5373_s4] sm:$0xf] }
 0x123   : > { %v1318_v48 = vpop.f32.mrf.mxu0  ;;  %3840 = vmatprep.subr.msk.bf16.mxu1 %vm2765_vm4, %v2715_v2  ;;  %v2767_v12 = vsel %vm2765_vm4, %v2715_v2, 0 }
 0x124   : > { %v1433_v15 = vadd.f32 %v1318_v48, %v4645_v32  ;;  %v3601_v57 = vpop.f32.mrf.mxu1  ;;  %3798 = vmatpush3.bf16.msra.mxu1 %v2767_v12 }
 0x125   : > { %v3568_v24 = vpop.f32.mrf.mxu0  ;;  %v4781_v59 = vadd.f32 %v3601_v57, %v1435_v9 }
 0x126   : > { %v1436_v44 = vadd.f32 %v3568_v24, %v4649_v42  ;;  %v1519_v50 = vpop.f32.mrf.mxu1 }
 0x127   : > { %v1321_v1 = vpop.f32.mrf.mxu0  ;;  %v4784_v45 = vadd.f32 %v1519_v50, %v1433_v15 }
 0x128   : > { %v4787_v13 = vadd.f32 %v1321_v1, %v4653_v10  ;;  %v3602_v23 = vpop.f32.mrf.mxu1 }
 0x129   : > { %v3571_v32 = vpop.f32.mrf.mxu0  ;;  %3774 = vmatmul.mubr.msk.bf16.gmra.mxu0 %vm789_vm2, %v4434_v26  ;;  %v4794_v42 = vadd.f32 %v3602_v23, %v1436_v44 }
 0x12a   : > { %v1439_v6 = vadd.f32 %v3571_v32, %v4657_v30  ;;  %3777 = vmatprep.mubr.msk.bf16.mxu0 %vm789_vm2, %v4438_v29  ;;  %v4799_v10 = vpop.f32.mrf.mxu1 }
 0x12b   : > { %v1334_v9 = vpop.f32.mrf.mxu0 }
 0x12c   : > { %v1437_v48 = vadd.f32 %v1334_v9, %v4661_v4  ;;  %v3605_v15 = vpop.f32.mrf.mxu1 }
 0x12d   : > { %v3572_v57 = vpop.f32.mrf.mxu0  ;;  %v4802_v24 = vadd.f32 %v3605_v15, %v1439_v6 }
 0x12e   : > { %v1440_v26 = vadd.f32 %v3572_v57, %v4665_v8  ;;  %v1535_v50 = vpop.f32.mrf.mxu1 }
 0x12f   : > { %v1337_v44 = vpop.f32.mrf.mxu0  ;;  %v4805_v1 = vadd.f32 %v1535_v50, %v1437_v48 }
 0x130   : > { %v4808_v30 = vadd.f32 %v1337_v44, %v4669_v43  ;;  %v3606_v29 = vpop.f32.mrf.mxu1 }
 0x131   : > { %v3575_v2 = vpop.f32.mrf.mxu0  ;;  %3778 = vmatmul.mubr.msk.bf16.gmra.mxu0 %vm789_vm2, %v4454_v54  ;;  %v4812_v23 = vadd.f32 %v3606_v29, %v1440_v26 }
 0x132   : > { %v1443_v4 = vadd.f32 %v3575_v2, %v4673_v34  ;;  %3781 = vmatprep.mubr.msk.bf16.mxu0 %vm789_vm2, %v4458_v60  ;;  %v4817_v8 = vpop.f32.mrf.mxu1 }
 0x133   : > { %v1350_v32 = vpop.f32.mrf.mxu0 }
 0x134   : > { %v1441_v12 = vadd.f32 %v1350_v32, %v4677_v35  ;;  %v3609_v6 = vpop.f32.mrf.mxu1 }
 0x135   : > { %v3576_v43 = vpop.f32.mrf.mxu0  ;;  %v4820_v9 = vadd.f32 %v3609_v6, %v1443_v4  ;;  %v1156_v4 = vadd.f32 %v4703_v56, %v4693_v55 }
 0x136   : > { %v1444_v48 = vadd.f32 %v3576_v43, %v4681_v25  ;;  %v1551_v15 = vpop.f32.mrf.mxu1 }
 0x137   : > { %v1353_v54 = vpop.f32.mrf.mxu0  ;;  %v4823_v57 = vadd.f32 %v1551_v15, %v1441_v12 }
 0x138   : > { %v4826_v34 = vadd.f32 %v1353_v54, %v4685_v51  ;;  %v3610_v26 = vpop.f32.mrf.mxu1 }
 0x139   : > { %v3579_v60 = vpop.f32.mrf.mxu0  ;;  %3782 = vmatmul.mubr.msk.bf16.gmra.mxu0 %vm789_vm2, %v4474_v38  ;;  %v4830_v50 = vadd.f32 %v3610_v26, %v1444_v48 }
 0x13a   : > { %v1447_v35 = vadd.f32 %v3579_v60, %v4689_v0  ;;  %3785 = vmatprep.mubr.msk.bf16.mxu0 %vm789_vm2, %v4478_v41  ;;  %v4835_v25 = vpop.f32.mrf.mxu1 }
 0x13b   : > { %v1366_v44 = vpop.f32.mrf.mxu0 }
 0x13c   : > { %v1445_v29 = vadd.f32 %v1366_v44, %v4695_v20  ;;  %v3613_v2 = vpop.f32.mrf.mxu1 }
 0x13d   : > { %v3580_v51 = vpop.f32.mrf.mxu0  ;;  %v4840_v32 = vadd.f32 %v3613_v2, %v1447_v35  ;;  %v1172_v35 = vadd.f32 %v4725_v52, %v4713_v36 }
 0x13e   : > { %v1448_v38 = vadd.f32 %v3580_v51, %v4699_v47  ;;  %v1567_v12 = vpop.f32.mrf.mxu1 }
 0x13f   : > { %v1369_v6 = vpop.f32.mrf.mxu0  ;;  %v4843_v0 = vadd.f32 %v1567_v12, %v1445_v29 }
 0x140   : > { %v1446_v43 = vadd.f32 %v1369_v6, %v1156_v4  ;;  %v3614_v41 = vpop.f32.mrf.mxu1 }
 0x141   : > { %v3583_v48 = vpop.f32.mrf.mxu0  ;;  %3786 = vmatmul.mubr.msk.bf16.gmra.mxu0 %vm789_vm2, %v4494_v28  ;;  %v4847_v20 = vadd.f32 %v3614_v41, %v1448_v38  ;;  %v1188_v41 = vadd.f32 %v4744_v31, %v4733_v16 }
 0x142   : > { %v1451_v15 = vadd.f32 %v3583_v48, %v4707_v62  ;;  %3789 = vmatprep.mubr.msk.bf16.mxu0 %vm789_vm2, %v4498_v37  ;;  %v1570_v55 = vpop.f32.mrf.mxu1 }
 0x143   : > { %v1382_v56 = vpop.f32.mrf.mxu0  ;;  %v4852_v47 = vadd.f32 %v1570_v55, %v1446_v43 }
 0x144   : > { %v1449_v54 = vadd.f32 %v1382_v56, %v4715_v7  ;;  %v3617_v26 = vpop.f32.mrf.mxu1 }
 0x145   : > { %v3584_v60 = vpop.f32.mrf.mxu0  ;;  %v4857_v44 = vadd.f32 %v3617_v26, %v1451_v15 }
 0x146   : > { %v1452_v28 = vadd.f32 %v3584_v60, %v4719_v17  ;;  %v1583_v29 = vpop.f32.mrf.mxu1 }
 0x147   : > { %v1385_v62 = vpop.f32.mrf.mxu0  ;;  %v4860_v2 = vadd.f32 %v1583_v29, %v1449_v54  ;;  %v1204_v29 = vadd.f32 %v4760_v3, %v4749_v19 }
 0x148   : > { %v1450_v37 = vadd.f32 %v1385_v62, %v1172_v35  ;;  %v3618_v51 = vpop.f32.mrf.mxu1 }
 0x149   : > { %v3587_v4 = vpop.f32.mrf.mxu0  ;;  %3790 = vmatmul.mubr.msk.bf16.gmra.mxu0 %vm789_vm2, %v4512_v14  ;;  %v4864_v7 = vadd.f32 %v3618_v51, %v1452_v28 }
 0x14a   : > { %v1455_v38 = vadd.f32 %v3587_v4, %v4729_v27  ;;  %3793 = vmatprep.mubr.msk.bf16.mxu0 %vm789_vm2, %v4352_v40  ;;  %v1586_v36 = vpop.f32.mrf.mxu1 }
 0x14b   : > { %v1398_v52 = vpop.f32.mrf.mxu0  ;;  %v4869_v17 = vadd.f32 %v1586_v36, %v1450_v37 }
 0x14c   : > { %v1453_v12 = vadd.f32 %v1398_v52, %v4735_v61  ;;  %v3621_v6 = vpop.f32.mrf.mxu1 }
 0x14d   : > { %v3588_v43 = vpop.f32.mrf.mxu0  ;;  %v4874_v48 = vadd.f32 %v3621_v6, %v1455_v38 }
 0x14e   : > { %v1456_v14 = vadd.f32 %v3588_v43, %v4740_v46  ;;  %v1599_v15 = vpop.f32.mrf.mxu1 }
 0x14f   : > { %v1401_v27 = vpop.f32.mrf.mxu0  ;;  %v4877_v55 = vadd.f32 %v1599_v15, %v1453_v12 }
 0x150   : > { %v1454_v40 = vadd.f32 %v1401_v27, %v1188_v41  ;;  %v3622_v56 = vpop.f32.mrf.mxu1 }
 0x151   : > { %v3591_v54 = vpop.f32.mrf.mxu0  ;;  %3794 = vmatmul.mubr.msk.bf16.gmra.mxu0 %vm789_vm2, %v785_v22  ;;  %v4883_v61 = vadd.f32 %v3622_v56, %v1456_v14 }
 0x152   : > { %v1459_v16 = vadd.f32 %v3591_v54, %v4747_v53  ;;  %v1602_v31 = vpop.f32.mrf.mxu1 }
 0x153   : > { %v1414_v26 = vpop.f32.mrf.mxu0  ;;  %v4886_v60 = vadd.f32 %v1602_v31, %v1454_v40 }
 0x154   : > { %v1457_v46 = vadd.f32 %v1414_v26, %v4751_v49  ;;  %v3625_v35 = vpop.f32.mrf.mxu1 }
 0x155   : > { %v3592_v28 = vpop.f32.mrf.mxu0  ;;  %v4891_v62 = vadd.f32 %v3625_v35, %v1459_v16 }
 0x156   : > { %v1460_v11 = vadd.f32 %v3592_v28, %v4755_v39  ;;  %v1615_v58 = vpop.f32.mrf.mxu1  ;;  %v1631_v39 = vadd.f32 %v4778_v5, %v4769_v63 }
 0x157   : > { %v1417_v22 = vpop.f32.mrf.mxu0  ;;  %v4894_v37 = vadd.f32 %v1615_v58, %v1457_v46 }
 0x158   : > { %v1458_v53 = vadd.f32 %v1417_v22, %v1204_v29  ;;  %v3626_v51 = vpop.f32.mrf.mxu1 }
 0x159   : > { %v3631_v4 = vpop.f32.mrf.mxu0  ;;  %v4896_v38 = vadd.f32 %v3626_v51, %v1460_v11 }
 0x15a   : > { %v1833_v49 = vadd.f32 %v3631_v4, %v4763_v33  ;;  %v1618_v36 = vpop.f32.mrf.mxu1 }
 0x15b   : > { %v1704_v52 = vpop.f32.mrf.mxu0  ;;  %v4899_v12 = vadd.f32 %v1618_v36, %v1458_v53 }
 0x15c   : > { %v1831_v19 = vadd.f32 %v1704_v52, %v4766_v18  ;;  %v3665_v3 = vpop.f32.mrf.mxu1 }
 0x15d   : > { %v3632_v6 = vpop.f32.mrf.mxu0  ;;  %v4904_v43 = vadd.f32 %v3665_v3, %v1833_v49 }
 0x15e   : > { %v4907_v41 = vadd.f32 %v3632_v6, %v4773_v21  ;;  %v1905_v14 = vpop.f32.mrf.mxu1  ;;  %v1635_v21 = vadd.f32 %v4799_v10, %v4787_v13 }
 0x15f   : > { %v1707_v15 = vpop.f32.mrf.mxu0  ;;  %v4909_v27 = vadd.f32 %v1905_v14, %v1831_v19 }
 0x160   : > { %v4911_v33 = vadd.f32 %v1707_v15, %v1631_v39  ;;  %v4913_v40 = vpop.f32.mrf.mxu1 }
 0x161   : > { %v3635_v56 = vpop.f32.mrf.mxu0 }
 0x162   : > { %v1837_v18 = vadd.f32 %v3635_v56, %v4781_v59  ;;  %v4916_v54 = vpop.f32.mrf.mxu1 }
 0x163   : > { %v1720_v16 = vpop.f32.mrf.mxu0 }
 0x164   : > { %v1835_v63 = vadd.f32 %v1720_v16, %v4784_v45  ;;  %v3669_v5 = vpop.f32.mrf.mxu1 }
 0x165   : > { %v3636_v31 = vpop.f32.mrf.mxu0  ;;  %v4921_v26 = vadd.f32 %v3669_v5, %v1837_v18 }
 0x166   : > { %v4924_v46 = vadd.f32 %v3636_v31, %v4794_v42  ;;  %v1921_v35 = vpop.f32.mrf.mxu1  ;;  %v1639_v42 = vadd.f32 %v4817_v8, %v4808_v30 }
 0x167   : > { %v1723_v28 = vpop.f32.mrf.mxu0  ;;  %v4926_v29 = vadd.f32 %v1921_v35, %v1835_v63 }
 0x168   : > { %v4928_v59 = vadd.f32 %v1723_v28, %v1635_v21  ;;  %v4930_v11 = vpop.f32.mrf.mxu1 }
 0x169   : > { %v3639_v58 = vpop.f32.mrf.mxu0 }
 0x16a   : > { %v1841_v45 = vadd.f32 %v3639_v58, %v4802_v24  ;;  %v4933_v22 = vpop.f32.mrf.mxu1 }
 0x16b   : > { %v1736_v53 = vpop.f32.mrf.mxu0 }
 0x16c   : > { %v1839_v13 = vadd.f32 %v1736_v53, %v4805_v1  ;;  %v3673_v10 = vpop.f32.mrf.mxu1 }
 0x16d   : > { %v3640_v51 = vpop.f32.mrf.mxu0  ;;  %v4938_v4 = vadd.f32 %v3673_v10, %v1841_v45 }
 0x16e   : > { %v4941_v49 = vadd.f32 %v3640_v51, %v4812_v23  ;;  %v1937_v36 = vpop.f32.mrf.mxu1  ;;  %v1643_v23 = vadd.f32 %v4835_v25, %v4826_v34 }
 0x16f   : > { %v1739_v52 = vpop.f32.mrf.mxu0  ;;  %v4943_v19 = vadd.f32 %v1937_v36, %v1839_v13 }
 0x170   : > { %v4945_v24 = vadd.f32 %v1739_v52, %v1639_v42  ;;  %v4947_v3 = vpop.f32.mrf.mxu1 }
 0x171   : > { %v3643_v6 = vpop.f32.mrf.mxu0 }
 0x172   : > { %v1845_v1 = vadd.f32 %v3643_v6, %v4820_v9  ;;  %v4950_v39 = vpop.f32.mrf.mxu1 }
 0x173   : > { %v1752_v14 = vpop.f32.mrf.mxu0 }
 0x174   : > { %v1843_v30 = vadd.f32 %v1752_v14, %v4823_v57  ;;  %v3677_v8 = vpop.f32.mrf.mxu1 }
 0x175   : > { %v3644_v15 = vpop.f32.mrf.mxu0  ;;  %v4955_v56 = vadd.f32 %v3677_v8, %v1845_v1 }
 0x176   : > { %v4958_v18 = vadd.f32 %v3644_v15, %v4830_v50  ;;  %v1953_v16 = vpop.f32.mrf.mxu1 }
 0x177   : > { %v1755_v63 = vpop.f32.mrf.mxu0  ;;  %v4960_v5 = vadd.f32 %v1953_v16, %v1843_v30 }
 0x178   : > { %v4962_v9 = vadd.f32 %v1755_v63, %v1643_v23  ;;  %v4964_v31 = vpop.f32.mrf.mxu1 }
 0x179   : > { %v3647_v21 = vpop.f32.mrf.mxu0 }
 0x17a   : > { %v1849_v57 = vadd.f32 %v3647_v21, %v4840_v32  ;;  %v4967_v35 = vpop.f32.mrf.mxu1 }
 0x17b   : > { %v1768_v28 = vpop.f32.mrf.mxu0 }
 0x17c   : > { %v1847_v34 = vadd.f32 %v1768_v28, %v4843_v0  ;;  %v3681_v25 = vpop.f32.mrf.mxu1 }
 0x17d   : > { %v3648_v58 = vpop.f32.mrf.mxu0  ;;  %v4970_v50 = vadd.f32 %v3681_v25, %v1849_v57 }
 0x17e   : > { %v4973_v45 = vadd.f32 %v3648_v58, %v4847_v20  ;;  %v1969_v53 = vpop.f32.mrf.mxu1 }
 0x17f   : > { %v1771_v13 = vpop.f32.mrf.mxu0  ;;  %v4975_v10 = vadd.f32 %v1969_v53, %v1847_v34 }
 0x180   : > { %v4978_v51 = vadd.f32 %v1771_v13, %v4852_v47  ;;  %v4980_v32 = vpop.f32.mrf.mxu1 }
 0x181   : > { %v3651_v42 = vpop.f32.mrf.mxu0 }
 0x182   : > { %v1853_v36 = vadd.f32 %v3651_v42, %v4857_v44  ;;  %v4983_v0 = vpop.f32.mrf.mxu1 }
 0x183   : > { %v1784_v52 = vpop.f32.mrf.mxu0 }
 0x184   : > { %v1851_v6 = vadd.f32 %v1784_v52, %v4860_v2  ;;  %v3685_v1 = vpop.f32.mrf.mxu1 }
 0x185   : > { %v3652_v20 = vpop.f32.mrf.mxu0  ;;  %v4986_v14 = vadd.f32 %v3685_v1, %v1853_v36 }
 0x186   : > { %v4989_v30 = vadd.f32 %v3652_v20, %v4864_v7  ;;  %v1985_v8 = vpop.f32.mrf.mxu1 }
 0x187   : > { %v1787_v47 = vpop.f32.mrf.mxu0  ;;  %v4991_v15 = vadd.f32 %v1985_v8, %v1851_v6 }
 0x188   : > { %5426 = vst [vmem:[#allocation2_spill] sm:$0xff] %v4989_v30  ;;  %v4994_v23 = vadd.f32 %v1787_v47, %v4869_v17  ;;  %v4996_v44 = vpop.f32.mrf.mxu1 }
 0x189   : > { %5428 = vst [vmem:[#allocation4_spill] sm:$0xff] %v4996_v44  ;;  %v3655_v16 = vpop.f32.mrf.mxu0 }
 0x18a   : > { %5427 = vst [vmem:[#allocation3_spill] sm:$0xff] %v4994_v23  ;;  %v1857_v63 = vadd.f32 %v3655_v16, %v4874_v48  ;;  %v4999_v2 = vpop.f32.mrf.mxu1 }
 0x18b   : > { %5429 = vst [vmem:[#allocation5_spill] sm:$0xff] %v4999_v2  ;;  %v1800_v21 = vpop.f32.mrf.mxu0 }
 0x18c   : > { %v1855_v57 = vadd.f32 %v1800_v21, %v4877_v55  ;;  %v3689_v28 = vpop.f32.mrf.mxu1 }
 0x18d   : > { %v3656_v7 = vpop.f32.mrf.mxu0  ;;  %v5002_v34 = vadd.f32 %v3689_v28, %v1857_v63 }
 0x18e   : > { %v5005_v25 = vadd.f32 %v3656_v7, %v4883_v61  ;;  %v2001_v58 = vpop.f32.mrf.mxu1 }
 0x18f   : > { %v1803_v17 = vpop.f32.mrf.mxu0  ;;  %v5007_v53 = vadd.f32 %v2001_v58, %v1855_v57 }
 0x190   : > { %5430 = vst [vmem:[#allocation6_spill] sm:$0xff] %v5005_v25  ;;  %v5010_v13 = vadd.f32 %v1803_v17, %v4886_v60  ;;  %v5012_v48 = vpop.f32.mrf.mxu1 }
 0x191   : > { %5432 = vst [vmem:[#allocation8_spill] sm:$0xff] %v5012_v48  ;;  %v3659_v42 = vpop.f32.mrf.mxu0 }
 0x192   : > { %5431 = vst [vmem:[#allocation7_spill] sm:$0xff] %v5010_v13  ;;  %v1861_v36 = vadd.f32 %v3659_v42, %v4891_v62  ;;  %v5015_v55 = vpop.f32.mrf.mxu1 }
 0x193   : > { %5433 = vst [vmem:[#allocation9_spill] sm:$0xff] %v5015_v55  ;;  %v1816_v52 = vpop.f32.mrf.mxu0 }
 0x194   : > { %v1859_v6 = vadd.f32 %v1816_v52, %v4894_v37  ;;  %v3693_v1 = vpop.f32.mrf.mxu1 }
 0x195   : > { %v3660_v61 = vpop.f32.mrf.mxu0  ;;  %v5018_v20 = vadd.f32 %v3693_v1, %v1861_v36 }
 0x196   : > { %v5021_v8 = vadd.f32 %v3660_v61, %v4896_v38  ;;  %v2017_v47 = vpop.f32.mrf.mxu1 }
 0x197   : > { %v1819_v60 = vpop.f32.mrf.mxu0  ;;  %v5023_v16 = vadd.f32 %v2017_v47, %v1859_v6 }
 0x198   : > { %5434 = vst [vmem:[#allocation10_spill] sm:$0xff] %v5021_v8  ;;  %v5026_v63 = vadd.f32 %v1819_v60, %v4899_v12  ;;  %v5028_v62 = vpop.f32.mrf.mxu1 }
 0x199   : > { %5436 = vst [vmem:[#allocation12_spill] sm:$0xff] %v5028_v62  ;;  %v3699_v21 = vpop.f32.mrf.mxu0 }
 0x19a   : > { %5435 = vst [vmem:[#allocation11_spill] sm:$0xff] %v5026_v63  ;;  %v5031_v57 = vadd.f32 %v3699_v21, %v4904_v43  ;;  %v5033_v37 = vpop.f32.mrf.mxu1 }
 0x19b   : > { %5437 = vst [vmem:[#allocation13_spill] sm:$0xff] %v5033_v37  ;;  %v2106_v28 = vpop.f32.mrf.mxu0 }
 0x19c   : > { %v5036_v7 = vadd.f32 %v2106_v28, %v4909_v27  ;;  %v5038_v38 = vpop.f32.mrf.mxu1 }
 0x19d   : > { %v3700_v58 = vpop.f32.mrf.mxu0 }
 0x19e   : > { %v5040_v17 = vpop.f32.mrf.mxu1 }
 0x19f   : > { %v5042_v42 = vpop.f32.mrf.mxu0 }
 0x1a0   : > { %v5044_v12 = vpop.f32.mrf.mxu1 }
 0x1a1   : > { %v3703_v36 = vpop.f32.mrf.mxu0 }
 0x1a2   : > { %v5047_v52 = vadd.f32 %v3703_v36, %v4921_v26  ;;  %v5049_v43 = vpop.f32.mrf.mxu1 }
 0x1a3   : > { %v2122_v6 = vpop.f32.mrf.mxu0 }
 0x1a4   : > { %v5052_v1 = vadd.f32 %v2122_v6, %v4926_v29  ;;  %v5056_v61 = vpop.f32.mrf.mxu1 }
 0x1a5   : > { %v5054_v27 = vpop.f32.mrf.mxu0 }
 0x1a6   : > { %v5063_v28 = vpop.f32.mrf.mxu1 }
 0x1a7   : > { %v5058_v47 = vpop.f32.mrf.mxu0 }
 0x1a8   : > { %v5070_v29 = vpop.f32.mrf.mxu1 }
 0x1a9   : > { %v3707_v60 = vpop.f32.mrf.mxu0 }
 0x1aa   : > { %v5061_v21 = vadd.f32 %v3707_v60, %v4938_v4  ;;  %v5077_v8 = vpop.f32.mrf.mxu1 }
 0x1ab   : > { %v2138_v26 = vpop.f32.mrf.mxu0 }
 0x1ac   : > { %v5066_v36 = vadd.f32 %v2138_v26, %v4943_v19  ;;  %v5084_v19 = vpop.f32.mrf.mxu1 }
 0x1ad   : > { %v5068_v37 = vpop.f32.mrf.mxu0 }
 0x1ae   : > { %v5091_v25 = vpop.f32.mrf.mxu1 }
 0x1af   : > { %v5072_v6 = vpop.f32.mrf.mxu0 }
 0x1b1   : > { %v3711_v63 = vpop.f32.mrf.mxu0 }
 0x1b2   : > { %v5075_v62 = vadd.f32 %v3711_v63, %v4955_v56 }
 0x1b3   : > { %v2154_v4 = vpop.f32.mrf.mxu0 }
 0x1b4   : > { %v5080_v60 = vadd.f32 %v2154_v4, %v4960_v5  ;;  %v5098_v5 = vpop.f32.mrf.mxu1 }
 0x1b5   : > { %v5082_v55 = vpop.f32.mrf.mxu0 }
 0x1b6   : > { %v5105_v30 = vpop.f32.mrf.mxu1 }
 0x1b7   : > { %v5086_v26 = vpop.f32.mrf.mxu0 }
 0x1b9   : > { %v3715_v13 = vpop.f32.mrf.mxu0 }
 0x1ba   : > { %v5089_v48 = vadd.f32 %v3715_v13, %v4970_v50 }
 0x1bb   : > { %v2170_v56 = vpop.f32.mrf.mxu0 }
 0x1bc   : > { %5438 = vst [vmem:[#allocation14_spill] sm:$0xff] %v5089_v48  ;;  %v5094_v63 = vadd.f32 %v2170_v56, %v4975_v10  ;;  %v5112_v10 = vpop.f32.mrf.mxu1 }
 0x1bd   : > { %v5096_v2 = vpop.f32.mrf.mxu0 }
 0x1be   : > { %5439 = vst [vmem:[#allocation15_spill] sm:$0xff] %v5094_v63  ;;  %5440 = vst [vmem:[#allocation16_spill] sm:$0xff] %v5096_v2 }
 0x1bf   : > { %v5100_v4 = vpop.f32.mrf.mxu0 }
 0x1c0   : > { %5441 = vst [vmem:[#allocation17_spill] sm:$0xff] %v5100_v4  ;;  %v5119_v4 = vpop.f32.mrf.mxu1 }
 0x1c1   : > { %v3719_v23 = vpop.f32.mrf.mxu0 }
 0x1c2   : > { %v5103_v44 = vadd.f32 %v3719_v23, %v4986_v14 }
 0x1c3   : > { %v2186_v50 = vpop.f32.mrf.mxu0 }
 0x1c4   : > { %5442 = vst [vmem:[#allocation18_spill] sm:$0xff] %v5103_v44  ;;  %v5108_v13 = vadd.f32 %v2186_v50, %v4991_v15  ;;  %v5126_v15 = vpop.f32.mrf.mxu1 }
 0x1c5   : > { %v5110_v48 = vpop.f32.mrf.mxu0 }
 0x1c6   : > { %5443 = vst [vmem:[#allocation19_spill] sm:$0xff] %v5108_v13  ;;  %5444 = vst [vmem:[#allocation20_spill] sm:$0xff] %v5110_v48 }
 0x1c7   : > { %v5114_v56 = vpop.f32.mrf.mxu0 }
 0x1c8   : > { %5445 = vst [vmem:[#allocation21_spill] sm:$0xff] %v5114_v56  ;;  %v5133_v56 = vpop.f32.mrf.mxu1 }
 0x1c9   : > { %v3723_v63 = vpop.f32.mrf.mxu0 }
 0x1ca   : > { %v5117_v2 = vadd.f32 %v3723_v63, %v5002_v34 }
 0x1cb   : > { %v2202_v14 = vpop.f32.mrf.mxu0 }
 0x1cc   : > { %5446 = vst [vmem:[#allocation22_spill] sm:$0xff] %v5117_v2  ;;  %v5122_v23 = vadd.f32 %v2202_v14, %v5007_v53  ;;  %v2035_v53 = vadd.f32 %v4913_v40, %v4907_v41  ;;  %v5142_v14 = vpop.f32.mrf.mxu1  ;;  %v2434_v41 = vadd.f32 %v5040_v17, %v5036_v7 }
 0x1cd   : > { %v5124_v44 = vpop.f32.mrf.mxu0 }
 0x1ce   : > { %5447 = vst [vmem:[#allocation23_spill] sm:$0xff] %v5122_v23 }
 0x1cf   : > { %v5128_v50 = vpop.f32.mrf.mxu0 }
 0x1d0   : > { %5448 = vst [vmem:[#allocation24_spill] sm:$0xff] %v5128_v50  ;;  %v2033_v50 = vadd.f32 %v4916_v54, %v4911_v33  ;;  %v2039_v33 = vadd.f32 %v4930_v11, %v4924_v46 }
 0x1d1   : > { %v3727_v13 = vpop.f32.mrf.mxu0 }
 0x1d2   : > { %v5131_v48 = vadd.f32 %v3727_v13, %v5018_v20  ;;  %v2236_v20 = vadd.f32 %v3700_v58, %v2035_v53 }
 0x1d3   : > { %v2218_v34 = vpop.f32.mrf.mxu0 }
 0x1d4   : > { %5449 = vst [vmem:[#allocation25_spill] sm:$0xff] %v5131_v48  ;;  %v5136_v63 = vadd.f32 %v2218_v34, %v5023_v16  ;;  %v2436_v48 = vadd.f32 %v5038_v38, %v5031_v57  ;;  %v2234_v16 = vadd.f32 %v5042_v42, %v2033_v50  ;;  %v5151_v34 = vpop.f32.mrf.mxu1  ;;  %v2437_v40 = vadd.f32 %v5044_v12, %v2236_v20 }
 0x1d5   : > { %v5138_v2 = vpop.f32.mrf.mxu0  ;;  %v2037_v57 = vadd.f32 %v4933_v22, %v4928_v59  ;;  %v2240_v50 = vadd.f32 %v5054_v27, %v2039_v33  ;;  %v2438_v22 = vadd.f32 %v5063_v28, %v5052_v1 }
 0x1d6   : > { %5450 = vst [vmem:[#allocation26_spill] sm:$0xff] %v5136_v63  ;;  %5451 = vst [vmem:[#allocation27_spill] sm:$0xff] %v5138_v2  ;;  %v2435_v54 = vadd.f32 %v5049_v43, %v2234_v16  ;;  %v5161_v38 = vpop.f32.mrf.mxu1 }
 0x1d7   : > { %v5144_v23 = vpop.f32.mrf.mxu0  ;;  %v2238_v46 = vadd.f32 %v5058_v47, %v2037_v57 }
 0x1d8   : > { %5452 = vst [vmem:[#allocation28_spill] sm:$0xff] %v5144_v23 }
 0x1d9   : > { %v3767_v13 = vpop.f32.mrf.mxu0 }
 0x1da   : > { %v2637_v2 = vadd.f32 %v3767_v13, %v2436_v48  ;;  %v2440_v48 = vadd.f32 %v5056_v61, %v5047_v52  ;;  %v2043_v52 = vadd.f32 %v4947_v3, %v4941_v49  ;;  %v2439_v61 = vadd.f32 %v5077_v8, %v2238_v46 }
 0x1db   : > { %v2508_v63 = vpop.f32.mrf.mxu0  ;;  %v2444_v49 = vadd.f32 %v5084_v19, %v5061_v21  ;;  %v2047_v21 = vadd.f32 %v4964_v31, %v4958_v18  ;;  %v2448_v18 = vadd.f32 %v5112_v10, %v5075_v62 }
 0x1dc   : > { %v2635_v58 = vadd.f32 %v2508_v63, %v2434_v41  ;;  %v2669_v7 = vmax.f32 %v2637_v2, 0.0  ;;  %v5167_v63 = vpop.f32.mrf.mxu1  ;;  %v2441_v2 = vadd.f32 %v5070_v29, %v2240_v50  ;;  %v2244_v28 = vadd.f32 %v5068_v37, %v2043_v52 }
 0x1dd   : > { %v3768_v23 = vpop.f32.mrf.mxu0  ;;  %v2442_v50 = vadd.f32 %v5091_v25, %v5066_v36  ;;  %v2248_v36 = vadd.f32 %v5082_v55, %v2047_v21  ;;  %v2051_v52 = vadd.f32 %v4980_v32, %v4973_v45  ;;  %v5459_v21 = vld [vmem:[#allocation3_spill] sm:$0xff] }
 0x1de   : > { %v2638_v53 = vadd.f32 %v3768_v23, %v2437_v40  ;;  %v2667_v11 = vmax.f32 %v2635_v58, 0.0  ;;  %v2041_v40 = vadd.f32 %v4950_v39, %v4945_v24  ;;  %v5178_v33 = vpop.f32.mrf.mxu1  ;;  %v2445_v37 = vadd.f32 %v5098_v5, %v2244_v28  ;;  %v5454_v28 = vld [vmem:[#allocation14_spill] sm:$0xff] }
 0x1df   : > { %v2511_v42 = vpop.f32.mrf.mxu0  ;;  %v2452_v45 = vadd.f32 %v5142_v14, %v5454_v28 }
 0x1e0   : > { %v2670_v17 = vmax.f32 %v2638_v53, 0.0  ;;  %v2636_v12 = vadd.f32 %v2511_v42, %v2435_v54  ;;  %v2242_v8 = vadd.f32 %v5072_v6, %v2041_v40  ;;  %v5185_v24 = vpop.f32.mrf.mxu1 }
 0x1e1   : > { %v3771_v20 = vpop.f32.mrf.mxu0 }
 0x1e2   : > { %v2700_v43 = vpack.c.bf16 %v2670_v17, %v2669_v7  ;;  %v2668_v23 = vmax.f32 %v2636_v12, 0.0  ;;  %v2641_v13 = vadd.f32 %v3771_v20, %v2440_v48  ;;  %v2443_v19 = vadd.f32 %v5105_v30, %v2242_v8  ;;  %v5196_v46 = vpop.f32.mrf.mxu1 }
 0x1e3   : > { %v2524_v59 = vpop.f32.mrf.mxu0  ;;  %v2045_v20 = vadd.f32 %v4967_v35, %v4962_v9 }
 0x1e4   : > { %v2699_v27 = vpack.c.bf16 %v2668_v23, %v2667_v11  ;;  %v2639_v47 = vadd.f32 %v2524_v59, %v2438_v22  ;;  %v2673_v29 = vmax.f32 %v2641_v13, 0.0  ;;  %v2390_v9 = vpop.f32.mrf.mxu1 }
 0x1e5   : > { %v3772_v16 = vpop.f32.mrf.mxu0  ;;  %v2246_v30 = vadd.f32 %v5086_v26, %v2045_v20 }
 0x1e6   : > { %v2642_v41 = vadd.f32 %v3772_v16, %v2441_v2  ;;  %3799 = vmatprep.mubr.msk.bf16.mxu1 %vm2716_vm5, %v2699_v27  ;;  %v2671_v53 = vmax.f32 %v2639_v47, 0.0  ;;  %v2446_v2 = vadd.f32 %v5119_v4, %v5080_v60  ;;  %v2449_v27 = vadd.f32 %v5126_v15, %v2248_v36  ;;  %v3757_v47 = vpop.f32.mrf.mxu1  ;;  %v5453_v60 = vld [vmem:[#allocation16_spill] sm:$0xff] }
 0x1e7   : > { %v2527_v1 = vpop.f32.mrf.mxu0  ;;  %3800 = vmatmul.mubr.msk.bf16.vlgmr.msra.gmra.mxu1 %vm2716_vm5, %v2700_v43  ;;  %v2447_v62 = vadd.f32 %v5133_v56, %v2246_v30  ;;  %v2252_v4 = vadd.f32 %v5453_v60, %v2051_v52  ;;  %v5455_v56 = vld [vmem:[#allocation17_spill] sm:$0xff]  ;;  %v5467_v60 = vld [vmem:[#allocation7_spill] sm:$0xff] }
 0x1e8   : > { %v2674_v54 = vmax.f32 %v2642_v41, 0.0  ;;  %v2640_v58 = vadd.f32 %v2527_v1, %v2439_v61  ;;  %v2049_v61 = vadd.f32 %v4983_v0, %v4978_v51  ;;  %v5456_v0 = vld [vmem:[#allocation15_spill] sm:$0xff] }
 0x1e9   : > { %v3775_v3 = vpop.f32.mrf.mxu0  ;;  %v2450_v8 = vadd.f32 %v5151_v34, %v5456_v0  ;;  %v5461_v34 = vld [vmem:[#allocation20_spill] sm:$0xff] }
 0x1ea   : > { %v2702_v57 = vpack.c.bf16 %v2674_v54, %v2673_v29  ;;  %v2672_v42 = vmax.f32 %v2640_v58, 0.0  ;;  %v2645_v17 = vadd.f32 %v3775_v3, %v2444_v49  ;;  %v2250_v29 = vadd.f32 %v5455_v56, %v2049_v61  ;;  %v2403_v3 = vpop.f32.mrf.mxu1 }
 0x1eb   : > { %v2540_v39 = vpop.f32.mrf.mxu0 }
 0x1ec   : > { %v2701_v7 = vpack.c.bf16 %v2672_v42, %v2671_v53  ;;  %v2643_v6 = vadd.f32 %v2540_v39, %v2442_v50  ;;  %v2677_v5 = vmax.f32 %v2645_v17, 0.0  ;;  %v2453_v53 = vadd.f32 %v5161_v38, %v2252_v4  ;;  %v5457_v50 = vld [vmem:[#allocation2_spill] sm:$0xff]  ;;  %v5468_v4 = vld [vmem:[#allocation9_spill] sm:$0xff] }
 0x1ed   : > { %v3776_v12 = vpop.f32.mrf.mxu0  ;;  %v2451_v14 = vadd.f32 %v5167_v63, %v2250_v29 }
 0x1ee   : > { %v2646_v48 = vadd.f32 %v3776_v12, %v2445_v37  ;;  %3803 = vmatprep.mubr.msk.bf16.mxu1 %vm2716_vm5, %v2701_v7  ;;  %v2675_v23 = vmax.f32 %v2643_v6, 0.0  ;;  %v5458_v37 = vld [vmem:[#allocation4_spill] sm:$0xff] }
 0x1ef   : > { %v2543_v25 = vpop.f32.mrf.mxu0  ;;  %3804 = vmatmul.mubr.msk.bf16.gmra.mxu1 %vm2716_vm5, %v2702_v57  ;;  %v2055_v7 = vadd.f32 %v5458_v37, %v5457_v50 }
 0x1f0   : > { %v2678_v11 = vmax.f32 %v2646_v48, 0.0  ;;  %v2644_v43 = vadd.f32 %v2543_v25, %v2443_v19  ;;  %v5460_v19 = vld [vmem:[#allocation5_spill] sm:$0xff]  ;;  %v3758_v48 = vpop.f32.mrf.mxu1 }
 0x1f1   : > { %v3779_v31 = vpop.f32.mrf.mxu0  ;;  %v2053_v6 = vadd.f32 %v5460_v19, %v5459_v21  ;;  %v2256_v38 = vadd.f32 %v5461_v34, %v2055_v7  ;;  %v5473_v7 = vld [vmem:[#allocation12_spill] sm:$0xff]  ;;  %v5474_v21 = vld [vmem:[#allocation11_spill] sm:$0xff]  ;;  %v5475_v19 = vld [vmem:[#allocation13_spill] sm:$0xff] }
 0x1f2   : > { %v2704_v59 = vpack.c.bf16 %v2678_v11, %v2677_v5  ;;  %v2676_v22 = vmax.f32 %v2644_v43, 0.0  ;;  %v2649_v13 = vadd.f32 %v3779_v31, %v2448_v18  ;;  %v5462_v11 = vld [vmem:[#allocation18_spill] sm:$0xff]  ;;  %v5463_v18 = vld [vmem:[#allocation21_spill] sm:$0xff] }
 0x1f3   : > { %v2556_v35 = vpop.f32.mrf.mxu0  ;;  %v2456_v43 = vadd.f32 %v5178_v33, %v5462_v11  ;;  %v2254_v31 = vadd.f32 %v5463_v18, %v2053_v6  ;;  %v2061_v6 = vadd.f32 %v5475_v19, %v5474_v21  ;;  %v3874_v19 = vld [vmem:[%s3993_s8 + $0x40] sm:$0xff] }
 0x1f4   : > { %v2703_v55 = vpack.c.bf16 %v2676_v22, %v2675_v23  ;;  %v2647_v10 = vadd.f32 %v2556_v35, %v2446_v2  ;;  %v2681_v15 = vmax.f32 %v2649_v13, 0.0  ;;  %v2406_v22 = vpop.f32.mrf.mxu1  ;;  %v5464_v2 = vld [vmem:[#allocation19_spill] sm:$0xff] }
 0x1f5   : > { %v3780_v16 = vpop.f32.mrf.mxu0  ;;  %v2455_v33 = vadd.f32 %v2390_v9, %v2254_v31  ;;  %v5470_v9 = vld [vmem:[#allocation24_spill] sm:$0xff] }
 0x1f6   : > { %v2650_v26 = vadd.f32 %v3780_v16, %v2449_v27  ;;  %3807 = vmatprep.mubr.msk.bf16.mxu1 %vm2716_vm5, %v2703_v55  ;;  %v2679_v54 = vmax.f32 %v2647_v10, 0.0  ;;  %v2454_v27 = vadd.f32 %v5185_v24, %v5464_v2  ;;  %v2457_v55 = vadd.f32 %v5196_v46, %v2256_v38  ;;  %v5466_v10 = vld [vmem:[#allocation8_spill] sm:$0xff] }
 0x1f7   : > { %v2559_v41 = vpop.f32.mrf.mxu0  ;;  %3808 = vmatmul.mubr.msk.bf16.gmra.mxu1 %vm2716_vm5, %v2704_v59 }
 0x1f8   : > { %v2682_v40 = vmax.f32 %v2650_v26, 0.0  ;;  %v2648_v1 = vadd.f32 %v2559_v41, %v2447_v62  ;;  %v5465_v62 = vld [vmem:[#allocation6_spill] sm:$0xff] }
 0x1f9   : > { %v3783_v32 = vpop.f32.mrf.mxu0  ;;  %v2059_v26 = vadd.f32 %v5466_v10, %v5465_v62 }
 0x1fa   : > { %v2706_v58 = vpack.c.bf16 %v2682_v40, %v2681_v15  ;;  %v2680_v49 = vmax.f32 %v2648_v1, 0.0  ;;  %v2653_v42 = vadd.f32 %v3783_v32, %v2452_v45  ;;  %v2057_v15 = vadd.f32 %v5468_v4, %v5467_v60  ;;  %v3761_v40 = vpop.f32.mrf.mxu1  ;;  %v5469_v32 = vld [vmem:[#allocation22_spill] sm:$0xff] }
 0x1fb   : > { %v2572_v51 = vpop.f32.mrf.mxu0  ;;  %v2260_v24 = vadd.f32 %v5124_v44, %v2059_v26  ;;  %v2460_v56 = vadd.f32 %v3757_v47, %v5469_v32  ;;  %v5472_v44 = vld [vmem:[#allocation10_spill] sm:$0xff] }
 0x1fc   : > { %v2705_v57 = vpack.c.bf16 %v2680_v49, %v2679_v54  ;;  %v2651_v17 = vadd.f32 %v2572_v51, %v2450_v8  ;;  %v2685_v25 = vmax.f32 %v2653_v42, 0.0  ;;  %v2258_v54 = vadd.f32 %v5470_v9, %v2057_v15  ;;  %v2419_v0 = vpop.f32.mrf.mxu1 }
 0x1fd   : > { %v3784_v39 = vpop.f32.mrf.mxu0  ;;  %v2461_v42 = vadd.f32 %v3758_v48, %v2260_v24  ;;  %v3865_v24 = vld [vmem:[%s3993_s8 + $0x10] sm:$0xff] }
 0x1fe   : > { %v2654_v12 = vadd.f32 %v3784_v39, %v2453_v53  ;;  %3811 = vmatprep.mubr.msk.bf16.mxu1 %vm2716_vm5, %v2705_v57  ;;  %v2683_v30 = vmax.f32 %v2651_v17, 0.0  ;;  %v5471_v53 = vld [vmem:[#allocation23_spill] sm:$0xff]  ;;  %v2459_v17 = vadd.f32 %v2406_v22, %v2258_v54 }
 0x1ff   : > { %v2575_v20 = vpop.f32.mrf.mxu0  ;;  %3812 = vmatmul.mubr.msk.bf16.gmra.mxu1 %vm2716_vm5, %v2706_v58  ;;  %v2458_v57 = vadd.f32 %v2403_v3, %v5471_v53  ;;  %v5476_v3 = vld [vmem:[#allocation27_spill] sm:$0xff] }
 0x200   : > { %v2686_v36 = vmax.f32 %v2654_v12, 0.0  ;;  %v2652_v5 = vadd.f32 %v2575_v20, %v2451_v14  ;;  %v2063_v14 = vadd.f32 %v5473_v7, %v5472_v44  ;;  %v3762_v20 = vpop.f32.mrf.mxu1  ;;  %v3872_v7 = vld [vmem:[%s3993_s8 + $0x28] sm:$0xff] }
 0x201   : > { %v3787_v63 = vpop.f32.mrf.mxu0 }
 0x202   : > { %v2708_v23 = vpack.c.bf16 %v2686_v36, %v2685_v25  ;;  %v2684_v59 = vmax.f32 %v2652_v5, 0.0  ;;  %v2657_v16 = vadd.f32 %v3787_v63, %v2456_v43  ;;  %v2264_v48 = vadd.f32 %v5476_v3, %v2063_v14  ;;  %v5477_v5 = vld [vmem:[#allocation25_spill] sm:$0xff]  ;;  %v5478_v63 = vld [vmem:[#allocation28_spill] sm:$0xff] }
 0x203   : > { %v2588_v35 = vpop.f32.mrf.mxu0  ;;  %v2464_v11 = vadd.f32 %v3761_v40, %v5477_v5  ;;  %v2262_v18 = vadd.f32 %v5478_v63, %v2061_v6  ;;  %v3877_v5 = vld [vmem:[%s3993_s8 + $0x70] sm:$0xff]  ;;  %v3878_v63 = vld [vmem:[%s3993_s8 + $0x60] sm:$0xff] }
 0x204   : > { %v2707_v13 = vpack.c.bf16 %v2684_v59, %v2683_v30  ;;  %v2655_v61 = vadd.f32 %v2588_v35, %v2454_v27  ;;  %v2689_v46 = vmax.f32 %v2657_v16, 0.0  ;;  %v2422_v59 = vpop.f32.mrf.mxu1  ;;  %v5479_v35 = vld [vmem:[#allocation26_spill] sm:$0xff]  ;;  %v2465_v27 = vadd.f32 %v3762_v20, %v2264_v48 }
 0x205   : > { %v3788_v52 = vpop.f32.mrf.mxu0  ;;  %v2462_v2 = vadd.f32 %v2419_v0, %v5479_v35  ;;  %v3869_v0 = vld [vmem:[%s3993_s8 + $0x30] sm:$0xff] }
 0x206   : > { %v2658_v41 = vadd.f32 %v3788_v52, %v2457_v55  ;;  %3815 = vmatprep.mubr.msk.bf16.mxu1 %vm2716_vm5, %v2707_v13  ;;  %v2687_v58 = vmax.f32 %v2655_v61, 0.0  ;;  %v2463_v52 = vadd.f32 %v2422_v59, %v2262_v18 }
 0x207   : > { %v2591_v1 = vpop.f32.mrf.mxu0  ;;  %3816 = vmatmul.mubr.msk.bf16.gmra.mxu1 %vm2716_vm5, %v2708_v23 }
 0x208   : > { %v2690_v28 = vmax.f32 %v2658_v41, 0.0  ;;  %v2656_v45 = vadd.f32 %v2591_v1, %v2455_v33 }
 0x209   : > { %v3791_v29 = vpop.f32.mrf.mxu0 }
 0x20a   : > { %v2710_v49 = vpack.c.bf16 %v2690_v28, %v2689_v46  ;;  %v2688_v51 = vmax.f32 %v2656_v45, 0.0  ;;  %v2661_v50 = vadd.f32 %v3791_v29, %v2460_v56  ;;  %v3866_v45 = vld [vmem:[%s3993_s8] sm:$0xff]  ;;  %v3867_v29 = vld [vmem:[%s3993_s8 + $0x18] sm:$0xff] }
 0x20b   : > { %v2604_v8 = vpop.f32.mrf.mxu0 }
 0x20c   : > { %v2709_v39 = vpack.c.bf16 %v2688_v51, %v2687_v58  ;;  %v2659_v12 = vadd.f32 %v2604_v8, %v2458_v57  ;;  %v2693_v38 = vmax.f32 %v2661_v50, 0.0  ;;  %v3868_v58 = vld [vmem:[%s3993_s8 + $0x8] sm:$0xff]  ;;  %v3870_v57 = vld [vmem:[%s3993_s8 + $0x20] sm:$0xff]  ;;  %v3871_v50 = vld [vmem:[%s3993_s8 + $0x38] sm:$0xff] }
 0x20d   : > { %v3792_v37 = vpop.f32.mrf.mxu0 }
 0x20e   : > { %v2662_v47 = vadd.f32 %v3792_v37, %v2461_v42  ;;  %3819 = vmatprep.mubr.msk.bf16.mxu1 %vm2716_vm5, %v2709_v39  ;;  %v2691_v31 = vmax.f32 %v2659_v12, 0.0  ;;  %v3873_v12 = vld [vmem:[%s3993_s8 + $0x50] sm:$0xff] }
 0x20f   : > { %v2607_v34 = vpop.f32.mrf.mxu0  ;;  %3820 = vmatmul.mubr.msk.bf16.gmra.mxu1 %vm2716_vm5, %v2710_v49 }
 0x210   : > { %v2694_v25 = vmax.f32 %v2662_v47, 0.0  ;;  %v2660_v36 = vadd.f32 %v2607_v34, %v2459_v17  ;;  %v3875_v34 = vld [vmem:[%s3993_s8 + $0x58] sm:$0xff] }
 0x211   : > { %v3795_v43 = vpop.f32.mrf.mxu0 }
 0x212   : > { %v2712_v30 = vpack.c.bf16 %v2694_v25, %v2693_v38  ;;  %v2692_v23 = vmax.f32 %v2660_v36, 0.0  ;;  %v2665_v13 = vadd.f32 %v3795_v43, %v2464_v11  ;;  %v3876_v38 = vld [vmem:[%s3993_s8 + $0x48] sm:$0xff] }
 0x213   : > { %v2620_v22 = vpop.f32.mrf.mxu0 }
 0x214   : > { %v2711_v55 = vpack.c.bf16 %v2692_v23, %v2691_v31  ;;  %v2663_v62 = vadd.f32 %v2620_v22, %v2462_v2  ;;  %v2697_v33 = vmax.f32 %v2665_v13, 0.0  ;;  %v3880_v22 = vld [vmem:[%s3993_s8 + $0x68] sm:$0xff] }
 0x215   : > { %v3796_v16 = vpop.f32.mrf.mxu0 }
 0x216   : > { %v2666_v10 = vadd.f32 %v3796_v16, %v2465_v27  ;;  %3823 = vmatprep.mubr.msk.bf16.mxu1 %vm2716_vm5, %v2711_v55  ;;  %v2695_v60 = vmax.f32 %v2663_v62, 0.0  ;;  %v3881_v27 = vld [vmem:[%s3993_s8 + $0x90] sm:$0xff]  ;;  %v3882_v16 = vld [vmem:[%s3993_s8 + $0x80] sm:$0xff] }
 0x217   : > { %v2623_v26 = vpop.f32.mrf.mxu0  ;;  %3824 = vmatmul.mubr.msk.bf16.gmra.mxu1 %vm2716_vm5, %v2712_v30  ;;  %v3879_v30 = vld [vmem:[%s3993_s8 + $0x78] sm:$0xff] }
 0x218   : > { %v2698_v61 = vmax.f32 %v2666_v10, 0.0  ;;  %v2664_v41 = vadd.f32 %v2623_v26, %v2463_v52  ;;  %v3883_v10 = vld [vmem:[%s3993_s8 + $0x98] sm:$0xff] }
 0x21a   : > { %v2714_v4 = vpack.c.bf16 %v2698_v61, %v2697_v33  ;;  %v2696_v15 = vmax.f32 %v2664_v41, 0.0  ;;  %v3884_v61 = vld [vmem:[%s3993_s8 + $0x88] sm:$0xff] }
 0x21c   : > { %v2713_v40 = vpack.c.bf16 %v2696_v15, %v2695_v60 }
 0x21e   : > { %3827 = vmatprep.mubr.msk.bf16.mxu1 %vm2716_vm5, %v2713_v40 }
 0x21f   : > { %3828 = vmatmul.mubr.msk.bf16.gmra.mxu1 %vm2716_vm5, %v2714_v4  ;;  %v3885_v4 = vld [vmem:[%s3993_s8 + $0xb0] sm:$0xff] }
 0x2a7   : > { %v3801_v1 = vpop.f32.mrf.mxu1 }
 0x2a8   : > { %v2932_v46 = vadd.f32 %v3865_v24, %v3801_v1  ;;  %v3886_v1 = vld [vmem:[%s3993_s8 + $0xa0] sm:$0xff] }
 0x2a9   : > { %v2803_v28 = vpop.f32.mrf.mxu1 }
 0x2aa   : > { %2964 = vst.msk [vmem:[%s5262_s10 + $0x10] sm:$0xff] %vm789_vm2, %v2932_v46  ;;  %v2930_v32 = vadd.f32 %v3866_v45, %v2803_v28  ;;  %v3887_v28 = vld [vmem:[%s3993_s8 + $0xb8] sm:$0xff] }
 0x2ab   : > { %v3802_v56 = vpop.f32.mrf.mxu1 }
 0x2ac   : > { %2962 = vst.msk [vmem:[%s5262_s10] sm:$0xff] %vm789_vm2, %v2930_v32  ;;  %v2933_v9 = vadd.f32 %v3867_v29, %v3802_v56  ;;  %v3888_v56 = vld [vmem:[%s3993_s8 + $0xa8] sm:$0xff] }
 0x2ad   : > { %v2806_v54 = vpop.f32.mrf.mxu1 }
 0x2ae   : > { %2965 = vst.msk [vmem:[%s5262_s10 + $0x18] sm:$0xff] %vm789_vm2, %v2933_v9  ;;  %v2931_v49 = vadd.f32 %v3868_v58, %v2806_v54  ;;  %v3889_v54 = vld [vmem:[%s3993_s8 + $0xd0] sm:$0xff] }
 0x2af   : > { %v3805_v51 = vpop.f32.mrf.mxu1 }
 0x2b0   : > { %2963 = vst.msk [vmem:[%s5262_s10 + $0x8] sm:$0xff] %vm789_vm2, %v2931_v49  ;;  %v2936_v8 = vadd.f32 %v3869_v0, %v3805_v51  ;;  %v3890_v51 = vld [vmem:[%s3993_s8 + $0xc0] sm:$0xff] }
 0x2b1   : > { %v2819_v53 = vpop.f32.mrf.mxu1 }
 0x2b2   : > { %2968 = vst.msk [vmem:[%s5262_s10 + $0x30] sm:$0xff] %vm789_vm2, %v2936_v8  ;;  %v2934_v42 = vadd.f32 %v3870_v57, %v2819_v53  ;;  %v3891_v53 = vld [vmem:[%s3993_s8 + $0xd8] sm:$0xff] }
 0x2b3   : > { %v3806_v39 = vpop.f32.mrf.mxu1 }
 0x2b4   : > { %2966 = vst.msk [vmem:[%s5262_s10 + $0x20] sm:$0xff] %vm789_vm2, %v2934_v42  ;;  %v2937_v37 = vadd.f32 %v3871_v50, %v3806_v39  ;;  %v3892_v39 = vld [vmem:[%s3993_s8 + $0xc8] sm:$0xff] }
 0x2b5   : > { %v2822_v44 = vpop.f32.mrf.mxu1 }
 0x2b6   : > { %2969 = vst.msk [vmem:[%s5262_s10 + $0x38] sm:$0xff] %vm789_vm2, %v2937_v37  ;;  %v2935_v14 = vadd.f32 %v3872_v7, %v2822_v44  ;;  %v3893_v44 = vld [vmem:[%s3993_s8 + $0xf0] sm:$0xff] }
 0x2b7   : > { %v3809_v17 = vpop.f32.mrf.mxu1 }
 0x2b8   : > { %2967 = vst.msk [vmem:[%s5262_s10 + $0x28] sm:$0xff] %vm789_vm2, %v2935_v14  ;;  %v2940_v47 = vadd.f32 %v3873_v12, %v3809_v17  ;;  %v3894_v17 = vld [vmem:[%s3993_s8 + $0xe0] sm:$0xff] }
 0x2b9   : > { %v2835_v21 = vpop.f32.mrf.mxu1 }
 0x2ba   : > { %2972 = vst.msk [vmem:[%s5262_s10 + $0x50] sm:$0xff] %vm789_vm2, %v2940_v47  ;;  %v2938_v6 = vadd.f32 %v3874_v19, %v2835_v21  ;;  %v3895_v21 = vld [vmem:[%s3993_s8 + $0xf8] sm:$0xff] }
 0x2bb   : > { %v3810_v20 = vpop.f32.mrf.mxu1 }
 0x2bc   : > { %2970 = vst.msk [vmem:[%s5262_s10 + $0x40] sm:$0xff] %vm789_vm2, %v2938_v6  ;;  %v2941_v3 = vadd.f32 %v3875_v34, %v3810_v20  ;;  %v3896_v20 = vld [vmem:[%s3993_s8 + $0xe8] sm:$0xff] }
 0x2bd   : > { %v2838_v48 = vpop.f32.mrf.mxu1 }
 0x2be   : > { %2973 = vst.msk [vmem:[%s5262_s10 + $0x58] sm:$0xff] %vm789_vm2, %v2941_v3  ;;  %v2939_v25 = vadd.f32 %v3876_v38, %v2838_v48 }
 0x2bf   : > { %v3813_v36 = vpop.f32.mrf.mxu1 }
 0x2c0   : > { %2971 = vst.msk [vmem:[%s5262_s10 + $0x48] sm:$0xff] %vm789_vm2, %v2939_v25  ;;  %v2944_v11 = vadd.f32 %v3877_v5, %v3813_v36 }
 0x2c1   : > { %v2851_v43 = vpop.f32.mrf.mxu1 }
 0x2c2   : > { %2976 = vst.msk [vmem:[%s5262_s10 + $0x70] sm:$0xff] %vm789_vm2, %v2944_v11  ;;  %v2942_v18 = vadd.f32 %v3878_v63, %v2851_v43 }
 0x2c3   : > { %v3814_v31 = vpop.f32.mrf.mxu1 }
 0x2c4   : > { %2974 = vst.msk [vmem:[%s5262_s10 + $0x60] sm:$0xff] %vm789_vm2, %v2942_v18  ;;  %v2945_v23 = vadd.f32 %v3879_v30, %v3814_v31 }
 0x2c5   : > { %v2854_v59 = vpop.f32.mrf.mxu1 }
 0x2c6   : > { %2977 = vst.msk [vmem:[%s5262_s10 + $0x78] sm:$0xff] %vm789_vm2, %v2945_v23  ;;  %v2943_v35 = vadd.f32 %v3880_v22, %v2854_v59 }
 0x2c7   : > { %v3817_v2 = vpop.f32.mrf.mxu1 }
 0x2c8   : > { %2975 = vst.msk [vmem:[%s5262_s10 + $0x68] sm:$0xff] %vm789_vm2, %v2943_v35  ;;  %v2948_v55 = vadd.f32 %v3881_v27, %v3817_v2 }
 0x2c9   : > { %v2867_v13 = vpop.f32.mrf.mxu1 }
 0x2ca   : > { %2980 = vst.msk [vmem:[%s5262_s10 + $0x90] sm:$0xff] %vm789_vm2, %v2948_v55  ;;  %v2946_v52 = vadd.f32 %v3882_v16, %v2867_v13 }
 0x2cb   : > { %v3818_v62 = vpop.f32.mrf.mxu1 }
 0x2cc   : > { %2978 = vst.msk [vmem:[%s5262_s10 + $0x80] sm:$0xff] %vm789_vm2, %v2946_v52  ;;  %v2949_v26 = vadd.f32 %v3883_v10, %v3818_v62 }
 0x2cd   : > { %v2870_v33 = vpop.f32.mrf.mxu1 }
 0x2ce   : > { %2981 = vst.msk [vmem:[%s5262_s10 + $0x98] sm:$0xff] %vm789_vm2, %v2949_v26  ;;  %v2947_v41 = vadd.f32 %v3884_v61, %v2870_v33 }
 0x2cf   : > { %v3821_v60 = vpop.f32.mrf.mxu1 }
 0x2d0   : > { %2979 = vst.msk [vmem:[%s5262_s10 + $0x88] sm:$0xff] %vm789_vm2, %v2947_v41  ;;  %v2952_v15 = vadd.f32 %v3885_v4, %v3821_v60 }
 0x2d1   : > { %v2883_v40 = vpop.f32.mrf.mxu1 }
 0x2d2   : > { %2984 = vst.msk [vmem:[%s5262_s10 + $0xb0] sm:$0xff] %vm789_vm2, %v2952_v15  ;;  %v2950_v24 = vadd.f32 %v3886_v1, %v2883_v40 }
 0x2d3   : > { %v3822_v46 = vpop.f32.mrf.mxu1 }
 0x2d4   : > { %2982 = vst.msk [vmem:[%s5262_s10 + $0xa0] sm:$0xff] %vm789_vm2, %v2950_v24  ;;  %v2953_v45 = vadd.f32 %v3887_v28, %v3822_v46 }
 0x2d5   : > { %v2886_v32 = vpop.f32.mrf.mxu1 }
 0x2d6   : > { %2985 = vst.msk [vmem:[%s5262_s10 + $0xb8] sm:$0xff] %vm789_vm2, %v2953_v45  ;;  %v2951_v29 = vadd.f32 %v3888_v56, %v2886_v32 }
 0x2d7   : > { %v3825_v9 = vpop.f32.mrf.mxu1 }
 0x2d8   : > { %2983 = vst.msk [vmem:[%s5262_s10 + $0xa8] sm:$0xff] %vm789_vm2, %v2951_v29  ;;  %v2956_v58 = vadd.f32 %v3889_v54, %v3825_v9 }
 0x2d9   : > { %v2899_v49 = vpop.f32.mrf.mxu1 }
 0x2da   : > { %2988 = vst.msk [vmem:[%s5262_s10 + $0xd0] sm:$0xff] %vm789_vm2, %v2956_v58  ;;  %v2954_v0 = vadd.f32 %v3890_v51, %v2899_v49 }
 0x2db   : > { %v3826_v8 = vpop.f32.mrf.mxu1 }
 0x2dc   : > { %2986 = vst.msk [vmem:[%s5262_s10 + $0xc0] sm:$0xff] %vm789_vm2, %v2954_v0  ;;  %v2957_v57 = vadd.f32 %v3891_v53, %v3826_v8 }
 0x2dd   : > { %v2902_v42 = vpop.f32.mrf.mxu1 }
 0x2de   : > { %2989 = vst.msk [vmem:[%s5262_s10 + $0xd8] sm:$0xff] %vm789_vm2, %v2957_v57  ;;  %v2955_v50 = vadd.f32 %v3892_v39, %v2902_v42 }
 0x2df   : > { %v3829_v37 = vpop.f32.mrf.mxu1 }
 0x2e0   : > { %2987 = vst.msk [vmem:[%s5262_s10 + $0xc8] sm:$0xff] %vm789_vm2, %v2955_v50  ;;  %v2960_v7 = vadd.f32 %v3893_v44, %v3829_v37 }
 0x2e1   : > { %v2915_v14 = vpop.f32.mrf.mxu1 }
 0x2e2   : > { %2992 = vst.msk [vmem:[%s5262_s10 + $0xf0] sm:$0xff] %vm789_vm2, %v2960_v7  ;;  %v2958_v12 = vadd.f32 %v3894_v17, %v2915_v14 }
 0x2e3   : > { %v3830_v47 = vpop.f32.mrf.mxu1 }
 0x2e4   : > { %2990 = vst.msk [vmem:[%s5262_s10 + $0xe0] sm:$0xff] %vm789_vm2, %v2958_v12  ;;  %v2961_v19 = vadd.f32 %v3895_v21, %v3830_v47 }
 0x2e5   : > { %v2918_v6 = vpop.f32.mrf.mxu1 }
 0x2e6   : > { %2993 = vst.msk [vmem:[%s5262_s10 + $0xf8] sm:$0xff] %vm789_vm2, %v2961_v19  ;;  %v2959_v34 = vadd.f32 %v3896_v20, %v2918_v6 }
 0x2e8   : > { %2991 = vst.msk [vmem:[%s5262_s10 + $0xe8] sm:$0xff] %vm789_vm2, %v2959_v34 }
 0x2e9 PF: > { %s15_s20 = sadd.s32 1, %s3919_s20   ;;  %s5480_s18 = smov %s3915_s19 }
 0x2ea   : > { %p12_p5 = scmp.ge.s32.totalorder %s15_s20, 4   ;;  %s5481_s19 = smov %s5483_s21 }
 0x2ec   :  { %14 = sbr.rel (!%p12_p5) target bundleno = 2 (0x2), region = 84 }

</bundles_post_ra>
